<compile_context>
chip_gen: v6e
topology: v6e:2x2x1
jax: 0.10.0
libtpu: 0.0.40
codegen_flags: <defaults>
</compile_context>

<pallas_src>
import functools

import jax
import jax.numpy as jnp
from jax.experimental import pallas as pl
from jax.experimental.pallas import tpu as pltpu

NUM_CLASSES_PAD = 128  # lane-dense final output width


# ----------------------------- fused Pallas kernel ------------------------------

def fused_gnn_kernel(a_ref, x_ref, w0_ref, conv_b_ref, fused_w_ref, jk_last_ref,
                     jk_b_ref, l1_w_ref, l1_b_ref, l2_w_ref, l2_b_ref, o_ref,
                     *, layers, hidden, graphs_per_block, nodes_per_graph):
    """One graph-batch block of the SimpleGNN forward, fully resident in VMEM."""
    f32 = jnp.float32
    bf16 = jnp.bfloat16

    a = a_ref[...]                       # (Nb, Nb) bf16, block-diag slice of A_hat
    x_in = x_ref[...]                    # (Nb, hidden) bf16, feature-padded

    # Layer 0: x = relu(A @ (x_in @ W0) + b0)
    xw = jnp.dot(x_in, w0_ref[...], preferred_element_type=f32)
    x = jnp.maximum(
        jnp.dot(a, xw.astype(bf16), preferred_element_type=f32) + conv_b_ref[0],
        0.0)

    nb = x.shape[0]
    jk_acc = jnp.zeros((nb, hidden), f32)

    # Layers 1..L-1: one fused dot x @ [W_{i+1} | Jk_i] gives both the next
    # layer's feature transform and layer i's JK contribution.
    for i in range(layers - 1):          # static unroll
        xb = x.astype(bf16)
        z = jnp.dot(xb, fused_w_ref[i], preferred_element_type=f32)   # (Nb, 2h)
        jk_acc = jk_acc + z[:, hidden:]
        x = jnp.maximum(
            jnp.dot(a, z[:, :hidden].astype(bf16), preferred_element_type=f32)
            + conv_b_ref[i + 1],
            0.0)

    # JK contribution of the last layer's output.
    jk_acc = jk_acc + jnp.dot(x.astype(bf16), jk_last_ref[...],
                              preferred_element_type=f32)
    y = jnp.maximum(jk_acc + jk_b_ref[...], 0.0)          # relu(jk_lin(cat(xs)))

    # global_add_pool: graphs inside the block are contiguous & equal-size, so a
    # VPU/XLU reshape+sum replaces the tiny (wasteful) M=graphs matmul.
    pooled = jnp.sum(y.reshape(graphs_per_block, nodes_per_graph, hidden), axis=1)

    y1 = jnp.maximum(
        jnp.dot(pooled.astype(bf16), l1_w_ref[...], preferred_element_type=f32)
        + l1_b_ref[...],
        0.0)                                               # relu(lin_1)
    logits = (jnp.dot(y1.astype(bf16), l2_w_ref[...], preferred_element_type=f32)
              + l2_b_ref[...])                             # lin_2 (lane-padded)

    # Softmax over the lane-padded class dim; padded classes carry bias -1e30
    # (f32) so exp underflows to exactly 0 and does not perturb real classes.
    m = jnp.max(logits, axis=-1, keepdims=True)
    e = jnp.exp(logits - m)
    s = jnp.sum(e, axis=-1, keepdims=True)
    r = pl.reciprocal(s, approx=True)
    r = r * (2.0 - s * r)                                  # one Newton step
    o_ref[...] = e * r


# ------------------------------- glue (JAX) --------------------------------

def gcn_norm_adj(edge_index, num_nodes):
    """D^{-1/2} (A + I) D^{-1/2} with self-loops, as in PyG GCNConv.

    Uses scatter-add so duplicate edges are counted (GCNConv message-passing
    semantics on multigraphs)."""
    a = jnp.zeros((num_nodes, num_nodes), jnp.float32)
    a = a.at[edge_index[0], edge_index[1]].add(1.0)
    a = a + jnp.eye(num_nodes, dtype=jnp.float32)
    deg = jnp.sum(a, axis=1)
    dinv = jax.lax.rsqrt(deg)
    return a * dinv[:, None] * dinv[None, :]


def simple_gnn_forward(params, a_hat, x, *, num_graphs, nodes_per_graph,
                       graphs_per_block):
    layers = len(params["convs"])
    num_features, hidden = params["convs"][0][0].shape
    num_classes = params["lin_2"][0].shape[1]
    num_nodes = x.shape[0]

    assert num_graphs % graphs_per_block == 0
    assert num_nodes == num_graphs * nodes_per_graph
    num_blocks = num_graphs // graphs_per_block
    nb = graphs_per_block * nodes_per_graph          # nodes per grid block

    f32, bf16 = jnp.float32, jnp.bfloat16

    # Zero-pad features / first-layer weight to `hidden` width (exact).
    x_pad = jnp.zeros((num_nodes, hidden), f32).at[:, :num_features].set(x)
    w0, _ = params["convs"][0]
    w0_pad = jnp.zeros((hidden, hidden), f32).at[:num_features, :].set(w0)

    conv_b = jnp.stack([b.reshape(1, hidden) for (_, b) in params["convs"]])

    jk_w, jk_b = params["jk_lin"]
    # Fold JK-cat + jk_lin: fused_w[i] = [W_{i+1} | Jk_i]  (host-side concat).
    fused_w = jnp.stack([
        jnp.concatenate(
            [params["convs"][i + 1][0], jk_w[i * hidden:(i + 1) * hidden, :]],
            axis=1)
        for i in range(layers - 1)])                 # (L-1, hidden, 2*hidden)
    jk_last = jk_w[(layers - 1) * hidden:, :]        # (hidden, hidden)

    l1_w, l1_b = params["lin_1"]
    l2_w, l2_b = params["lin_2"]

    # Lane-pad the classifier so the single HBM output store is lane-dense.
    l2_w_pad = jnp.zeros((hidden, NUM_CLASSES_PAD), f32).at[:, :num_classes].set(l2_w)
    l2_b_pad = jnp.full((1, NUM_CLASSES_PAD), -1e30, f32).at[:, :num_classes].set(l2_b)

    args = (
        a_hat.astype(bf16), x_pad.astype(bf16), w0_pad.astype(bf16), conv_b,
        fused_w.astype(bf16), jk_last.astype(bf16), jk_b.reshape(1, hidden),
        l1_w.astype(bf16), l1_b.reshape(1, hidden),
        l2_w_pad.astype(bf16), l2_b_pad,
    )

    kernel = functools.partial(
        fused_gnn_kernel, layers=layers, hidden=hidden,
        graphs_per_block=graphs_per_block, nodes_per_graph=nodes_per_graph)

    out_pad = pl.pallas_call(
        kernel,
        out_shape=jax.ShapeDtypeStruct((num_graphs, NUM_CLASSES_PAD), f32),
        grid=(num_blocks,),
        in_specs=[
            # A_hat diagonal blocks (graphs never connect across blocks).
            pl.BlockSpec((nb, nb), lambda i: (i, i)),
            pl.BlockSpec((nb, hidden), lambda i: (i, 0)),
            # Weights: constant block index -> VMEM-resident across the grid.
            pl.BlockSpec((hidden, hidden), lambda i: (0, 0)),
            pl.BlockSpec((layers, 1, hidden), lambda i: (0, 0, 0)),
            pl.BlockSpec((layers - 1, hidden, 2 * hidden), lambda i: (0, 0, 0)),
            pl.BlockSpec((hidden, hidden), lambda i: (0, 0)),
            pl.BlockSpec((1, hidden), lambda i: (0, 0)),
            pl.BlockSpec((hidden, hidden), lambda i: (0, 0)),
            pl.BlockSpec((1, hidden), lambda i: (0, 0)),
            pl.BlockSpec((hidden, NUM_CLASSES_PAD), lambda i: (0, 0)),
            pl.BlockSpec((1, NUM_CLASSES_PAD), lambda i: (0, 0)),
        ],
        out_specs=pl.BlockSpec((graphs_per_block, NUM_CLASSES_PAD),
                               lambda i: (i, 0)),
        compiler_params=pltpu.CompilerParams(
            dimension_semantics=("parallel",)),      # megacore on v7x
    )(*args)
    return out_pad[:, :num_classes]


def reference_forward(params, a_hat, x, *, num_graphs, nodes_per_graph):
    """Pure-JAX reference mirroring the kernel's bf16 operand rounding."""
    layers = len(params["convs"])
    hidden = params["convs"][0][0].shape[1]
    f32, bf16 = jnp.float32, jnp.bfloat16
    b16 = lambda v: v.astype(bf16).astype(f32)

    a = b16(a_hat)
    xcur = b16(x)
    jk_w, jk_b = params["jk_lin"]
    jk_acc = jnp.zeros((x.shape[0], hidden), f32)
    for i in range(layers):
        w, b = params["convs"][i]
        xw = b16(jnp.dot(xcur, b16(w)))
        xcur = b16(jnp.maximum(jnp.dot(a, xw) + b.reshape(1, -1), 0.0))
        jk_acc = jk_acc + jnp.dot(xcur, b16(jk_w[i * hidden:(i + 1) * hidden, :]))
    y = jnp.maximum(jk_acc + jk_b.reshape(1, -1), 0.0)
    pooled = jnp.sum(y.reshape(num_graphs, nodes_per_graph, hidden), axis=1)
    l1_w, l1_b = params["lin_1"]
    l2_w, l2_b = params["lin_2"]
    y1 = jnp.maximum(jnp.dot(b16(pooled), b16(l1_w)) + l1_b.reshape(1, -1), 0.0)
    logits = jnp.dot(b16(y1), b16(l2_w)) + l2_b.reshape(1, -1)
    return jax.nn.softmax(logits, axis=-1)


def init_linear_params(key, fan_in, fan_out):
    k1, k2 = jax.random.split(key)
    bound = 1.0 / (fan_in ** 0.5)
    w = jax.random.uniform(k1, (fan_in, fan_out), jnp.float32, -bound, bound)
    b = jax.random.uniform(k2, (fan_out,), jnp.float32, -bound, bound)
    return w, b


def init_params(key, num_features, hidden, layers, num_classes):
    params = {"convs": []}
    keys = jax.random.split(key, layers + 3)
    in_dim = num_features
    for i in range(layers):
        params["convs"].append(init_linear_params(keys[i], in_dim, hidden))
        in_dim = hidden
    params["jk_lin"] = init_linear_params(keys[layers], hidden * layers, hidden)
    params["lin_1"] = init_linear_params(keys[layers + 1], hidden, hidden)
    params["lin_2"] = init_linear_params(keys[layers + 2], hidden, num_classes)
    return params


# --------------------------------- main -------------------------------------

if __name__ == "__main__":
    # Synthetic batched "dataset": 16 graphs x 16 nodes (ring topology each),
    # split into 2 grid blocks of 8 graphs (128 nodes) each.
    num_graphs = 16
    nodes_per_graph = 16
    graphs_per_block = 8
    num_nodes = num_graphs * nodes_per_graph
    num_features = 8
    hidden = 32
    layers = 6
    num_classes = 4

    key = jax.random.PRNGKey(0)
    k_x, k_p = jax.random.split(key)

    # Node features.
    x = jax.random.normal(k_x, (num_nodes, num_features), jnp.float32)

    # Symmetric ring edges within each graph (no cross-graph edges).
    src, dst = [], []
    for g in range(num_graphs):
        off = g * nodes_per_graph
        for i in range(nodes_per_graph):
            u, v = off + i, off + (i + 1) % nodes_per_graph
            src += [u, v]
            dst += [v, u]
    edge_index = jnp.array([src, dst], dtype=jnp.int32)

    a_hat = gcn_norm_adj(edge_index, num_nodes)
    params = init_params(k_p, num_features, hidden, layers, num_classes)

    out = simple_gnn_forward(params, a_hat, x, num_graphs=num_graphs,
                             nodes_per_graph=nodes_per_graph,
                             graphs_per_block=graphs_per_block)
    out = jax.block_until_ready(out)

    ref = reference_forward(params, a_hat, x, num_graphs=num_graphs,
                            nodes_per_graph=nodes_per_graph)

    assert out.shape == (num_graphs, num_classes)
    assert bool(jnp.all(jnp.isfinite(out)))
    assert bool(jnp.allclose(jnp.sum(out, axis=-1), 1.0, atol=1e-4))
    assert bool(jnp.allclose(out, ref, atol=2e-2)), \
        float(jnp.max(jnp.abs(out - ref)))
    print("KERNEL_OK")
</pallas_src>

<mosaic_0001>
module attributes {stable_mosaic.version = 11 : i64} {
  func.func @fused_gnn_kernel(%arg0: i32, %arg1: memref<128x128xbf16, #tpu.memory_space<vmem>>, %arg2: memref<128x32xbf16, #tpu.memory_space<vmem>>, %arg3: memref<32x32xbf16, #tpu.memory_space<vmem>>, %arg4: memref<6x1x32xf32, #tpu.memory_space<vmem>>, %arg5: memref<5x32x64xbf16, #tpu.memory_space<vmem>>, %arg6: memref<32x32xbf16, #tpu.memory_space<vmem>>, %arg7: memref<1x32xf32, #tpu.memory_space<vmem>>, %arg8: memref<32x32xbf16, #tpu.memory_space<vmem>>, %arg9: memref<1x32xf32, #tpu.memory_space<vmem>>, %arg10: memref<32x128xbf16, #tpu.memory_space<vmem>>, %arg11: memref<1x128xf32, #tpu.memory_space<vmem>>, %arg12: memref<8x128xf32, #tpu.memory_space<vmem>>) attributes {dimension_semantics = [#tpu.dimension_semantics<parallel>], iteration_bounds = array<i64: 2>, scalar_prefetch = 0 : i64, scratch_operands = 0 : i64, tpu.core_type = #tpu.core_type<tc>, window_params = [{transform_indices = @transform_0, window_bounds = array<i64: 128, 128>}, {transform_indices = @transform_1, window_bounds = array<i64: 128, 32>}, {pipeline_mode = #tpu.pipeline_mode<synchronous>, transform_indices = @transform_2, window_bounds = array<i64: 32, 32>}, {pipeline_mode = #tpu.pipeline_mode<synchronous>, transform_indices = @transform_3, window_bounds = array<i64: 6, 1, 32>}, {pipeline_mode = #tpu.pipeline_mode<synchronous>, transform_indices = @transform_4, window_bounds = array<i64: 5, 32, 64>}, {pipeline_mode = #tpu.pipeline_mode<synchronous>, transform_indices = @transform_5, window_bounds = array<i64: 32, 32>}, {pipeline_mode = #tpu.pipeline_mode<synchronous>, transform_indices = @transform_6, window_bounds = array<i64: 1, 32>}, {pipeline_mode = #tpu.pipeline_mode<synchronous>, transform_indices = @transform_7, window_bounds = array<i64: 32, 32>}, {pipeline_mode = #tpu.pipeline_mode<synchronous>, transform_indices = @transform_8, window_bounds = array<i64: 1, 32>}, {pipeline_mode = #tpu.pipeline_mode<synchronous>, transform_indices = @transform_9, window_bounds = array<i64: 32, 128>}, {pipeline_mode = #tpu.pipeline_mode<synchronous>, transform_indices = @transform_10, window_bounds = array<i64: 1, 128>}, {transform_indices = @transform_11, window_bounds = array<i64: 8, 128>}]} {
    %c0 = arith.constant 0 : index
    %c0_0 = arith.constant 0 : index
    %0 = vector.load %arg1[%c0, %c0_0] : memref<128x128xbf16, #tpu.memory_space<vmem>>, vector<128x128xbf16>
    %c0_1 = arith.constant 0 : index
    %c0_2 = arith.constant 0 : index
    %1 = vector.load %arg2[%c0_1, %c0_2] : memref<128x32xbf16, #tpu.memory_space<vmem>>, vector<128x32xbf16>
    %c0_3 = arith.constant 0 : index
    %c0_4 = arith.constant 0 : index
    %2 = vector.load %arg3[%c0_3, %c0_4] : memref<32x32xbf16, #tpu.memory_space<vmem>>, vector<32x32xbf16>
    %cst = arith.constant dense<0.000000e+00> : vector<128x32xf32>
    %3 = tpu.matmul %1, %2, %cst {dimension_numbers = #tpu.dot_dimension_numbers<[1], [0], [0], [1], [0, 0, 1, 1], [], []>} : vector<128x32xbf16>, vector<32x32xbf16>, vector<128x32xf32> -> vector<128x32xf32>
    %4 = arith.truncf %3 : vector<128x32xf32> to vector<128x32xbf16>
    %cst_5 = arith.constant dense<0.000000e+00> : vector<128x32xf32>
    %5 = tpu.matmul %0, %4, %cst_5 {dimension_numbers = #tpu.dot_dimension_numbers<[1], [0], [0], [1], [0, 0, 1, 1], [], []>} : vector<128x128xbf16>, vector<128x32xbf16>, vector<128x32xf32> -> vector<128x32xf32>
    %c0_6 = arith.constant 0 : index
    %c0_7 = arith.constant 0 : index
    %c0_8 = arith.constant 0 : index
    %6 = vector.load %arg4[%c0_6, %c0_7, %c0_8] : memref<6x1x32xf32, #tpu.memory_space<vmem>>, vector<1x1x32xf32>
    %7 = vector.shape_cast %6 : vector<1x1x32xf32> to vector<1x32xf32>
    %8 = vector.broadcast %7 : vector<1x32xf32> to vector<128x32xf32>
    %9 = arith.addf %5, %8 : vector<128x32xf32>
    %cst_9 = arith.constant 0.000000e+00 : f32
    %10 = vector.broadcast %cst_9 : f32 to vector<128x32xf32>
    %11 = arith.maximumf %9, %10 : vector<128x32xf32>
    %cst_10 = arith.constant 0.000000e+00 : f32
    %12 = vector.broadcast %cst_10 : f32 to vector<128x32xf32>
    %13 = arith.truncf %11 : vector<128x32xf32> to vector<128x32xbf16>
    %c0_11 = arith.constant 0 : index
    %c0_12 = arith.constant 0 : index
    %c0_13 = arith.constant 0 : index
    %14 = vector.load %arg5[%c0_11, %c0_12, %c0_13] : memref<5x32x64xbf16, #tpu.memory_space<vmem>>, vector<1x32x64xbf16>
    %15 = vector.shape_cast %14 : vector<1x32x64xbf16> to vector<32x64xbf16>
    %cst_14 = arith.constant dense<0.000000e+00> : vector<128x64xf32>
    %16 = tpu.matmul %13, %15, %cst_14 {dimension_numbers = #tpu.dot_dimension_numbers<[1], [0], [0], [1], [0, 0, 1, 1], [], []>} : vector<128x32xbf16>, vector<32x64xbf16>, vector<128x64xf32> -> vector<128x64xf32>
    %17 = vector.extract_strided_slice %16 {offsets = [0, 32], sizes = [128, 32], strides = [1, 1]} : vector<128x64xf32> to vector<128x32xf32>
    %18 = arith.addf %12, %17 : vector<128x32xf32>
    %19 = vector.extract_strided_slice %16 {offsets = [0, 0], sizes = [128, 32], strides = [1, 1]} : vector<128x64xf32> to vector<128x32xf32>
    %20 = arith.truncf %19 : vector<128x32xf32> to vector<128x32xbf16>
    %cst_15 = arith.constant dense<0.000000e+00> : vector<128x32xf32>
    %21 = tpu.matmul %0, %20, %cst_15 {dimension_numbers = #tpu.dot_dimension_numbers<[1], [0], [0], [1], [0, 0, 1, 1], [], []>} : vector<128x128xbf16>, vector<128x32xbf16>, vector<128x32xf32> -> vector<128x32xf32>
    %c1 = arith.constant 1 : index
    %c0_16 = arith.constant 0 : index
    %c0_17 = arith.constant 0 : index
    %22 = vector.load %arg4[%c1, %c0_16, %c0_17] : memref<6x1x32xf32, #tpu.memory_space<vmem>>, vector<1x1x32xf32>
    %23 = vector.shape_cast %22 : vector<1x1x32xf32> to vector<1x32xf32>
    %24 = vector.broadcast %23 : vector<1x32xf32> to vector<128x32xf32>
    %25 = arith.addf %21, %24 : vector<128x32xf32>
    %cst_18 = arith.constant 0.000000e+00 : f32
    %26 = vector.broadcast %cst_18 : f32 to vector<128x32xf32>
    %27 = arith.maximumf %25, %26 : vector<128x32xf32>
    %28 = arith.truncf %27 : vector<128x32xf32> to vector<128x32xbf16>
    %c1_19 = arith.constant 1 : index
    %c0_20 = arith.constant 0 : index
    %c0_21 = arith.constant 0 : index
    %29 = vector.load %arg5[%c1_19, %c0_20, %c0_21] : memref<5x32x64xbf16, #tpu.memory_space<vmem>>, vector<1x32x64xbf16>
    %30 = vector.shape_cast %29 : vector<1x32x64xbf16> to vector<32x64xbf16>
    %cst_22 = arith.constant dense<0.000000e+00> : vector<128x64xf32>
    %31 = tpu.matmul %28, %30, %cst_22 {dimension_numbers = #tpu.dot_dimension_numbers<[1], [0], [0], [1], [0, 0, 1, 1], [], []>} : vector<128x32xbf16>, vector<32x64xbf16>, vector<128x64xf32> -> vector<128x64xf32>
    %32 = vector.extract_strided_slice %31 {offsets = [0, 32], sizes = [128, 32], strides = [1, 1]} : vector<128x64xf32> to vector<128x32xf32>
    %33 = arith.addf %18, %32 : vector<128x32xf32>
    %34 = vector.extract_strided_slice %31 {offsets = [0, 0], sizes = [128, 32], strides = [1, 1]} : vector<128x64xf32> to vector<128x32xf32>
    %35 = arith.truncf %34 : vector<128x32xf32> to vector<128x32xbf16>
    %cst_23 = arith.constant dense<0.000000e+00> : vector<128x32xf32>
    %36 = tpu.matmul %0, %35, %cst_23 {dimension_numbers = #tpu.dot_dimension_numbers<[1], [0], [0], [1], [0, 0, 1, 1], [], []>} : vector<128x128xbf16>, vector<128x32xbf16>, vector<128x32xf32> -> vector<128x32xf32>
    %c2 = arith.constant 2 : index
    %c0_24 = arith.constant 0 : index
    %c0_25 = arith.constant 0 : index
    %37 = vector.load %arg4[%c2, %c0_24, %c0_25] : memref<6x1x32xf32, #tpu.memory_space<vmem>>, vector<1x1x32xf32>
    %38 = vector.shape_cast %37 : vector<1x1x32xf32> to vector<1x32xf32>
    %39 = vector.broadcast %38 : vector<1x32xf32> to vector<128x32xf32>
    %40 = arith.addf %36, %39 : vector<128x32xf32>
    %cst_26 = arith.constant 0.000000e+00 : f32
    %41 = vector.broadcast %cst_26 : f32 to vector<128x32xf32>
    %42 = arith.maximumf %40, %41 : vector<128x32xf32>
    %43 = arith.truncf %42 : vector<128x32xf32> to vector<128x32xbf16>
    %c2_27 = arith.constant 2 : index
    %c0_28 = arith.constant 0 : index
    %c0_29 = arith.constant 0 : index
    %44 = vector.load %arg5[%c2_27, %c0_28, %c0_29] : memref<5x32x64xbf16, #tpu.memory_space<vmem>>, vector<1x32x64xbf16>
    %45 = vector.shape_cast %44 : vector<1x32x64xbf16> to vector<32x64xbf16>
    %cst_30 = arith.constant dense<0.000000e+00> : vector<128x64xf32>
    %46 = tpu.matmul %43, %45, %cst_30 {dimension_numbers = #tpu.dot_dimension_numbers<[1], [0], [0], [1], [0, 0, 1, 1], [], []>} : vector<128x32xbf16>, vector<32x64xbf16>, vector<128x64xf32> -> vector<128x64xf32>
    %47 = vector.extract_strided_slice %46 {offsets = [0, 32], sizes = [128, 32], strides = [1, 1]} : vector<128x64xf32> to vector<128x32xf32>
    %48 = arith.addf %33, %47 : vector<128x32xf32>
    %49 = vector.extract_strided_slice %46 {offsets = [0, 0], sizes = [128, 32], strides = [1, 1]} : vector<128x64xf32> to vector<128x32xf32>
    %50 = arith.truncf %49 : vector<128x32xf32> to vector<128x32xbf16>
    %cst_31 = arith.constant dense<0.000000e+00> : vector<128x32xf32>
    %51 = tpu.matmul %0, %50, %cst_31 {dimension_numbers = #tpu.dot_dimension_numbers<[1], [0], [0], [1], [0, 0, 1, 1], [], []>} : vector<128x128xbf16>, vector<128x32xbf16>, vector<128x32xf32> -> vector<128x32xf32>
    %c3 = arith.constant 3 : index
    %c0_32 = arith.constant 0 : index
    %c0_33 = arith.constant 0 : index
    %52 = vector.load %arg4[%c3, %c0_32, %c0_33] : memref<6x1x32xf32, #tpu.memory_space<vmem>>, vector<1x1x32xf32>
    %53 = vector.shape_cast %52 : vector<1x1x32xf32> to vector<1x32xf32>
    %54 = vector.broadcast %53 : vector<1x32xf32> to vector<128x32xf32>
    %55 = arith.addf %51, %54 : vector<128x32xf32>
    %cst_34 = arith.constant 0.000000e+00 : f32
    %56 = vector.broadcast %cst_34 : f32 to vector<128x32xf32>
    %57 = arith.maximumf %55, %56 : vector<128x32xf32>
    %58 = arith.truncf %57 : vector<128x32xf32> to vector<128x32xbf16>
    %c3_35 = arith.constant 3 : index
    %c0_36 = arith.constant 0 : index
    %c0_37 = arith.constant 0 : index
    %59 = vector.load %arg5[%c3_35, %c0_36, %c0_37] : memref<5x32x64xbf16, #tpu.memory_space<vmem>>, vector<1x32x64xbf16>
    %60 = vector.shape_cast %59 : vector<1x32x64xbf16> to vector<32x64xbf16>
    %cst_38 = arith.constant dense<0.000000e+00> : vector<128x64xf32>
    %61 = tpu.matmul %58, %60, %cst_38 {dimension_numbers = #tpu.dot_dimension_numbers<[1], [0], [0], [1], [0, 0, 1, 1], [], []>} : vector<128x32xbf16>, vector<32x64xbf16>, vector<128x64xf32> -> vector<128x64xf32>
    %62 = vector.extract_strided_slice %61 {offsets = [0, 32], sizes = [128, 32], strides = [1, 1]} : vector<128x64xf32> to vector<128x32xf32>
    %63 = arith.addf %48, %62 : vector<128x32xf32>
    %64 = vector.extract_strided_slice %61 {offsets = [0, 0], sizes = [128, 32], strides = [1, 1]} : vector<128x64xf32> to vector<128x32xf32>
    %65 = arith.truncf %64 : vector<128x32xf32> to vector<128x32xbf16>
    %cst_39 = arith.constant dense<0.000000e+00> : vector<128x32xf32>
    %66 = tpu.matmul %0, %65, %cst_39 {dimension_numbers = #tpu.dot_dimension_numbers<[1], [0], [0], [1], [0, 0, 1, 1], [], []>} : vector<128x128xbf16>, vector<128x32xbf16>, vector<128x32xf32> -> vector<128x32xf32>
    %c4 = arith.constant 4 : index
    %c0_40 = arith.constant 0 : index
    %c0_41 = arith.constant 0 : index
    %67 = vector.load %arg4[%c4, %c0_40, %c0_41] : memref<6x1x32xf32, #tpu.memory_space<vmem>>, vector<1x1x32xf32>
    %68 = vector.shape_cast %67 : vector<1x1x32xf32> to vector<1x32xf32>
    %69 = vector.broadcast %68 : vector<1x32xf32> to vector<128x32xf32>
    %70 = arith.addf %66, %69 : vector<128x32xf32>
    %cst_42 = arith.constant 0.000000e+00 : f32
    %71 = vector.broadcast %cst_42 : f32 to vector<128x32xf32>
    %72 = arith.maximumf %70, %71 : vector<128x32xf32>
    %73 = arith.truncf %72 : vector<128x32xf32> to vector<128x32xbf16>
    %c4_43 = arith.constant 4 : index
    %c0_44 = arith.constant 0 : index
    %c0_45 = arith.constant 0 : index
    %74 = vector.load %arg5[%c4_43, %c0_44, %c0_45] : memref<5x32x64xbf16, #tpu.memory_space<vmem>>, vector<1x32x64xbf16>
    %75 = vector.shape_cast %74 : vector<1x32x64xbf16> to vector<32x64xbf16>
    %cst_46 = arith.constant dense<0.000000e+00> : vector<128x64xf32>
    %76 = tpu.matmul %73, %75, %cst_46 {dimension_numbers = #tpu.dot_dimension_numbers<[1], [0], [0], [1], [0, 0, 1, 1], [], []>} : vector<128x32xbf16>, vector<32x64xbf16>, vector<128x64xf32> -> vector<128x64xf32>
    %77 = vector.extract_strided_slice %76 {offsets = [0, 32], sizes = [128, 32], strides = [1, 1]} : vector<128x64xf32> to vector<128x32xf32>
    %78 = arith.addf %63, %77 : vector<128x32xf32>
    %79 = vector.extract_strided_slice %76 {offsets = [0, 0], sizes = [128, 32], strides = [1, 1]} : vector<128x64xf32> to vector<128x32xf32>
    %80 = arith.truncf %79 : vector<128x32xf32> to vector<128x32xbf16>
    %cst_47 = arith.constant dense<0.000000e+00> : vector<128x32xf32>
    %81 = tpu.matmul %0, %80, %cst_47 {dimension_numbers = #tpu.dot_dimension_numbers<[1], [0], [0], [1], [0, 0, 1, 1], [], []>} : vector<128x128xbf16>, vector<128x32xbf16>, vector<128x32xf32> -> vector<128x32xf32>
    %c5 = arith.constant 5 : index
    %c0_48 = arith.constant 0 : index
    %c0_49 = arith.constant 0 : index
    %82 = vector.load %arg4[%c5, %c0_48, %c0_49] : memref<6x1x32xf32, #tpu.memory_space<vmem>>, vector<1x1x32xf32>
    %83 = vector.shape_cast %82 : vector<1x1x32xf32> to vector<1x32xf32>
    %84 = vector.broadcast %83 : vector<1x32xf32> to vector<128x32xf32>
    %85 = arith.addf %81, %84 : vector<128x32xf32>
    %cst_50 = arith.constant 0.000000e+00 : f32
    %86 = vector.broadcast %cst_50 : f32 to vector<128x32xf32>
    %87 = arith.maximumf %85, %86 : vector<128x32xf32>
    %88 = arith.truncf %87 : vector<128x32xf32> to vector<128x32xbf16>
    %c0_51 = arith.constant 0 : index
    %c0_52 = arith.constant 0 : index
    %89 = vector.load %arg6[%c0_51, %c0_52] : memref<32x32xbf16, #tpu.memory_space<vmem>>, vector<32x32xbf16>
    %cst_53 = arith.constant dense<0.000000e+00> : vector<128x32xf32>
    %90 = tpu.matmul %88, %89, %cst_53 {dimension_numbers = #tpu.dot_dimension_numbers<[1], [0], [0], [1], [0, 0, 1, 1], [], []>} : vector<128x32xbf16>, vector<32x32xbf16>, vector<128x32xf32> -> vector<128x32xf32>
    %91 = arith.addf %78, %90 : vector<128x32xf32>
    %c0_54 = arith.constant 0 : index
    %c0_55 = arith.constant 0 : index
    %92 = vector.load %arg7[%c0_54, %c0_55] : memref<1x32xf32, #tpu.memory_space<vmem>>, vector<1x32xf32>
    %93 = vector.broadcast %92 : vector<1x32xf32> to vector<128x32xf32>
    %94 = arith.addf %91, %93 : vector<128x32xf32>
    %cst_56 = arith.constant 0.000000e+00 : f32
    %95 = vector.broadcast %cst_56 : f32 to vector<128x32xf32>
    %96 = arith.maximumf %94, %95 : vector<128x32xf32>
    %97 = vector.shape_cast %96 : vector<128x32xf32> to vector<8x16x32xf32>
    %cst_57 = arith.constant dense<0.000000e+00> : vector<8x32xf32>
    %98 = vector.multi_reduction <add>, %97, %cst_57 [1] : vector<8x16x32xf32> to vector<8x32xf32>
    %99 = arith.truncf %98 : vector<8x32xf32> to vector<8x32xbf16>
    %c0_58 = arith.constant 0 : index
    %c0_59 = arith.constant 0 : index
    %100 = vector.load %arg8[%c0_58, %c0_59] : memref<32x32xbf16, #tpu.memory_space<vmem>>, vector<32x32xbf16>
    %cst_60 = arith.constant dense<0.000000e+00> : vector<8x32xf32>
    %101 = tpu.matmul %99, %100, %cst_60 {dimension_numbers = #tpu.dot_dimension_numbers<[1], [0], [0], [1], [0, 0, 1, 1], [], []>} : vector<8x32xbf16>, vector<32x32xbf16>, vector<8x32xf32> -> vector<8x32xf32>
    %c0_61 = arith.constant 0 : index
    %c0_62 = arith.constant 0 : index
    %102 = vector.load %arg9[%c0_61, %c0_62] : memref<1x32xf32, #tpu.memory_space<vmem>>, vector<1x32xf32>
    %103 = vector.broadcast %102 : vector<1x32xf32> to vector<8x32xf32>
    %104 = arith.addf %101, %103 : vector<8x32xf32>
    %cst_63 = arith.constant 0.000000e+00 : f32
    %105 = vector.broadcast %cst_63 : f32 to vector<8x32xf32>
    %106 = arith.maximumf %104, %105 : vector<8x32xf32>
    %107 = arith.truncf %106 : vector<8x32xf32> to vector<8x32xbf16>
    %c0_64 = arith.constant 0 : index
    %c0_65 = arith.constant 0 : index
    %108 = vector.load %arg10[%c0_64, %c0_65] : memref<32x128xbf16, #tpu.memory_space<vmem>>, vector<32x128xbf16>
    %cst_66 = arith.constant dense<0.000000e+00> : vector<8x128xf32>
    %109 = tpu.matmul %107, %108, %cst_66 {dimension_numbers = #tpu.dot_dimension_numbers<[1], [0], [0], [1], [0, 0, 1, 1], [], []>} : vector<8x32xbf16>, vector<32x128xbf16>, vector<8x128xf32> -> vector<8x128xf32>
    %c0_67 = arith.constant 0 : index
    %c0_68 = arith.constant 0 : index
    %110 = vector.load %arg11[%c0_67, %c0_68] : memref<1x128xf32, #tpu.memory_space<vmem>>, vector<1x128xf32>
    %111 = vector.broadcast %110 : vector<1x128xf32> to vector<8x128xf32>
    %112 = arith.addf %109, %111 : vector<8x128xf32>
    %cst_69 = arith.constant dense<0xFF800000> : vector<8xf32>
    %113 = vector.multi_reduction <maximumf>, %112, %cst_69 [1] : vector<8x128xf32> to vector<8xf32>
    %114 = vector.shape_cast %113 : vector<8xf32> to vector<8x1xf32>
    %115 = vector.broadcast %114 : vector<8x1xf32> to vector<8x128xf32>
    %116 = arith.subf %112, %115 : vector<8x128xf32>
    %117 = math.exp %116 : vector<8x128xf32>
    %cst_70 = arith.constant dense<0.000000e+00> : vector<8xf32>
    %118 = vector.multi_reduction <add>, %117, %cst_70 [1] : vector<8x128xf32> to vector<8xf32>
    %119 = vector.shape_cast %118 : vector<8xf32> to vector<8x1xf32>
    %120 = tpu.reciprocal %119 {approx = true} : vector<8x1xf32> -> vector<8x1xf32>
    %121 = arith.mulf %119, %120 : vector<8x1xf32>
    %cst_71 = arith.constant 2.000000e+00 : f32
    %122 = vector.broadcast %cst_71 : f32 to vector<8x1xf32>
    %123 = arith.subf %122, %121 : vector<8x1xf32>
    %124 = arith.mulf %120, %123 : vector<8x1xf32>
    %125 = vector.broadcast %124 : vector<8x1xf32> to vector<8x128xf32>
    %126 = arith.mulf %117, %125 : vector<8x128xf32>
    %c0_72 = arith.constant 0 : index
    %c0_73 = arith.constant 0 : index
    %127 = vector.load %arg12[%c0_72, %c0_73] : memref<8x128xf32, #tpu.memory_space<vmem>>, vector<8x128xf32>
    tpu.vector_store %arg12[%c0_72, %c0_73], %126 {strides = array<i32>} : memref<8x128xf32, #tpu.memory_space<vmem>>, vector<8x128xf32>,
    return
  }
  func.func @transform_0(%arg0: i32) -> (i32, i32) {
    %c0_i32 = arith.constant 0 : i32
    return %arg0, %arg0 : i32, i32
  }
  func.func @transform_1(%arg0: i32) -> (i32, i32) {
    %c0_i32 = arith.constant 0 : i32
    %c0_i32_0 = arith.constant 0 : i32
    return %arg0, %c0_i32 : i32, i32
  }
  func.func @transform_2(%arg0: i32) -> (i32, i32) {
    %c0_i32 = arith.constant 0 : i32
    %c0_i32_0 = arith.constant 0 : i32
    %c0_i32_1 = arith.constant 0 : i32
    return %c0_i32, %c0_i32_0 : i32, i32
  }
  func.func @transform_3(%arg0: i32) -> (i32, i32, i32) {
    %c0_i32 = arith.constant 0 : i32
    %c0_i32_0 = arith.constant 0 : i32
    %c0_i32_1 = arith.constant 0 : i32
    %c0_i32_2 = arith.constant 0 : i32
    return %c0_i32, %c0_i32_0, %c0_i32_1 : i32, i32, i32
  }
  func.func @transform_4(%arg0: i32) -> (i32, i32, i32) {
    %c0_i32 = arith.constant 0 : i32
    %c0_i32_0 = arith.constant 0 : i32
    %c0_i32_1 = arith.constant 0 : i32
    %c0_i32_2 = arith.constant 0 : i32
    return %c0_i32, %c0_i32_0, %c0_i32_1 : i32, i32, i32
  }
  func.func @transform_5(%arg0: i32) -> (i32, i32) {
    %c0_i32 = arith.constant 0 : i32
    %c0_i32_0 = arith.constant 0 : i32
    %c0_i32_1 = arith.constant 0 : i32
    return %c0_i32, %c0_i32_0 : i32, i32
  }
  func.func @transform_6(%arg0: i32) -> (i32, i32) {
    %c0_i32 = arith.constant 0 : i32
    %c0_i32_0 = arith.constant 0 : i32
    %c0_i32_1 = arith.constant 0 : i32
    return %c0_i32, %c0_i32_0 : i32, i32
  }
  func.func @transform_7(%arg0: i32) -> (i32, i32) {
    %c0_i32 = arith.constant 0 : i32
    %c0_i32_0 = arith.constant 0 : i32
    %c0_i32_1 = arith.constant 0 : i32
    return %c0_i32, %c0_i32_0 : i32, i32
  }
  func.func @transform_8(%arg0: i32) -> (i32, i32) {
    %c0_i32 = arith.constant 0 : i32
    %c0_i32_0 = arith.constant 0 : i32
    %c0_i32_1 = arith.constant 0 : i32
    return %c0_i32, %c0_i32_0 : i32, i32
  }
  func.func @transform_9(%arg0: i32) -> (i32, i32) {
    %c0_i32 = arith.constant 0 : i32
    %c0_i32_0 = arith.constant 0 : i32
    %c0_i32_1 = arith.constant 0 : i32
    return %c0_i32, %c0_i32_0 : i32, i32
  }
  func.func @transform_10(%arg0: i32) -> (i32, i32) {
    %c0_i32 = arith.constant 0 : i32
    %c0_i32_0 = arith.constant 0 : i32
    %c0_i32_1 = arith.constant 0 : i32
    return %c0_i32, %c0_i32_0 : i32, i32
  }
  func.func @transform_11(%arg0: i32) -> (i32, i32) {
    %c0_i32 = arith.constant 0 : i32
    %c0_i32_0 = arith.constant 0 : i32
    return %arg0, %c0_i32 : i32, i32
  }
}

</mosaic_0001>

<bundles_post_ra>
// kernel: tpu_custom_call.1
= control target key start
LH: loop header
LB: loop body
LE: loop exit
PB: predicated region body
PF: predicated region fallthrough
CT: control target
= control target key end

     0   :  { %16 = vsyncpa [#allocation3], 0  ;;  %s4604_s0 = inlined_call_operand.hbm [shape: bf16[256,256], index: 0, kind: input, shape index: {}]   ;;  %s4605_s1 = inlined_call_operand.vmem [shape: bf16[256,32], index: 1, kind: input, shape index: {}]   ;;  %s4606_s2 = inlined_call_operand.vmem [shape: bf16[32,32], index: 2, kind: input, shape index: {}]   ;;  %s4607_s3 = inlined_call_operand.vmem [shape: f32[6,1,32], index: 3, kind: input, shape index: {}]   ;;  %s4608_s4 = inlined_call_operand.vmem [shape: bf16[5,32,64], index: 4, kind: input, shape index: {}]   ;;  %s4609_s5 = inlined_call_operand.vmem [shape: bf16[32,32], index: 5, kind: input, shape index: {}]   ;;  %s4610_s6 = inlined_call_operand.vmem [shape: f32[1,32], index: 6, kind: input, shape index: {}]   ;;  %s4611_s7 = inlined_call_operand.vmem [shape: bf16[32,32], index: 7, kind: input, shape index: {}]   ;;  %s4612_s8 = inlined_call_operand.vmem [shape: f32[1,32], index: 8, kind: input, shape index: {}]   ;;  %s4613_s9 = inlined_call_operand.vmem [shape: bf16[32,128], index: 9, kind: input, shape index: {}]   ;;  %s4614_s10 = inlined_call_operand.vmem [shape: f32[1,128], index: 10, kind: input, shape index: {}]   ;;  %s4615_s11 = inlined_call_operand.hbm [shape: f32[16,128], index: 11, kind: output, shape index: {}]  }
   0x1   :  { %18 = vsyncpa [#allocation3 + $0x1], 0 }
   0x2   :  { %19 = vsyncpa [#allocation4], 0 }
   0x3   :  { %21 = vsyncpa [#allocation4 + $0x1], 0  ;;  %s3867_s17 = smov 0   ;;  %s3869_s18 = smov 0  }
   0x4   :  { %s3871_s19 = smov 0   ;;  %s3873_s20 = smov 0  }
   0x5   :  { %s3875_s21 = smov 0   ;;  %s3877_s22 = smov 0  }
   0x6   :  { %s3879_s23 = smov 0  }
   0x7 LB: > { %4624 = sst [smem:[#allocation8_spill]] %s3772_s17  ;;  %s3901_s24 = sadd.s32 4294967295, %s3796_s23   ;;  %s3796_s23 = sphi %s3879_s23, %s4642_s23   ;;  %s3792_s22 = sphi %s3877_s22, %s4646_s22   ;;  %s3788_s21 = sphi %s3875_s21, %s4650_s21   ;;  %s3784_s20 = sphi %s3873_s20, %s4649_s20   ;;  %s3780_s19 = sphi %s3871_s19, %s4644_s19   ;;  %s3776_s18 = sphi %s3869_s18, %s4648_s18   ;;  %s3772_s17 = sphi %s3867_s17, %s4647_s17  }
   0x8   : > { %4625 = sst [smem:[#allocation9_spill]] %s3780_s19  ;;  %s2898_s25 = sadd.s32 4294967294, %s3796_s23  }
   0x9   : > { %4626 = sst [smem:[#allocation10_spill]] %s3792_s22  ;;  %s3905_s26 = sadd.s32 1, %s3796_s23  }
   0xa   : > { %4627 = sst [smem:[#allocation11_spill]] %s3905_s26  ;;  %s36_s27 = sadd.s32 1, %s3792_s22 }
   0xb   : > { %s31_s28 = ssub.s32 %s3796_s23, %s3905_s26  ;;  %p43_p0 = scmp.ne.s32.totalorder %s3792_s22, %s3788_s21 }
   0xc   : > { %s33_s29 = sor.u32 %s31_s28, %s31_s28  ;;  %p44_p1 = scmp.eq.s32.totalorder %s3796_s23, 0 }
   0xd   : > { %p34_p2 = scmp.eq.s32.totalorder %s33_s29, 0  ;;  %p49_p3 = scmp.ne.s32.totalorder %s3788_s21, %s3784_s20 }
   0xe   : > { %p3914_p4 = por %p44_p1, %p43_p0  ;;  %p50_p5 = scmp.eq.s32.totalorder %s3901_s24, 0 }
   0xf   : > { %s3920_s12 = scalar_select %p34_p2, %s3792_s22, %s36_s27  }
  0x10   : > { %p3922_p6 = por %p50_p5, %p49_p3  ;;  %p275_p7 = scmp.eq.s32.totalorder %s31_s28, 0 }
  0x11   : > { %4629 = sst [smem:[#allocation12_spill]] %s3920_s12  ;;  %s277_s14 = sadd.s32 1, %s3780_s19 }
  0x12   : > { %s4630_s13 = scalar_select %p3922_p6, 1, 0 }
  0x13   : > { %p287_p8 = scmp.ne.s32.totalorder %s3780_s19, %s3776_s18  ;;  %p288_p9 = scmp.eq.s32.totalorder %s3901_s24, 1 }
  0x14   : > { %s3930_s15 = scalar_select %p275_p7, %s3780_s19, %s277_s14  }
  0x15   : > { %p293_p10 = scmp.ne.s32.totalorder %s3776_s18, %s3772_s17  ;;  %p294_p11 = scmp.eq.s32.totalorder %s2898_s25, 1 }
  0x16   : > { %4631 = sst [smem:[#allocation13_spill]] %s3930_s15  ;;  %p3936_p13 = por %p288_p9, %p287_p8 }
  0x17   : > { %p3569_p0 = scmp.lt.s32.totalorder %s3796_s23, 2  ;;  %p3941_p1 = por %p294_p11, %p293_p10 }
  0x18   : > { %s4632_s16 = scalar_select %p3936_p13, 1, 0 }
  0x19   : > { %s4633_s20 = scalar_select %p3941_p1, 1, 0 }
  0x1a   : > { %s341_s27 = sand.u32 1, %s3792_s22   ;;  %s3036_s29 = sshll.u32 %s3796_s23, 5 }
  0x1b   : > { %4634 = sst [smem:[#allocation14_spill]] %s4633_s20  ;;  %s2901_s28 = sshll.u32 %s341_s27, 6 }
  0x1c   : > { %s351_s12 = sadd.s32 %s3796_s23, %s3036_s29  ;;  %s345_s14 = scalar_lea.vmem [#allocation2], %s2901_s28 }
  0x1d   : > { %s354_s15 = sshll.u32 %s345_s14, 4  ;;  %s2904_s19 = sshll.u32 %s351_s12, 6  ;;  %s3948_s15 = int_to_ptr.vmem [resolvable:$true] %s354_s15 }
  0x1e   : > { %s3953_s17 = scalar_lea.hbm %s4604_s0, %s2904_s19  ;;  %p3957_p2 = pnand %p3569_p0, %p3914_p4 }
  0x1f   : > { %s3961_s29 = scalar_lea.sflag [#allocation3], %s341_s27  ;;  %s3680_s28 = scalar_lea.hbm %s3953_s17, 1024 }
  0x20   : > { %p3681_p3 = scmp.ne.s32.totalorder %s3953_s17, %s3680_s28  ;;  %p3682_p5 = pneg %p3957_p2 }
  0x21   : > { %s3685_s30 = scalar_lea.hbm %s4604_s0, 4096  ;;  %p3686_p4 = scmp.lt.s32.totalorder %s3953_s17, %s4604_s0 }
  0x22   : > { %p3683_p7 = pnand %p3682_p5, %p3681_p3  ;;  %p3687_p9 = scmp.lt.s32.totalorder %s3685_s30, %s3680_s28 }
  0x24   : > { %p3684_p8 = pneg %p3683_p7  ;;  %p3688_p10 = por %p3687_p9, %p3686_p4 }
  0x26   : > { %p3689_p11 = pnand %p3688_p10, %p3684_p8 }
  0x28   : > { %3692 = shalt.err (!%p3689_p11)
}
  0x29   : > { %s3693_s27 = scalar_lea.vmem %s3948_s15, 1024  ;;  %s3798_s25 = smov [#allocation2]  }
  0x2a   : > { %p3694_p0 = scmp.ne.s32.totalorder %s3948_s15, %s3693_s27  ;;  %s3698_s22 = sshll.u32 %s3798_s25, 4  ;;  %s3699_s22 = int_to_ptr.vmem [resolvable:$false] %s3698_s22 }
  0x2b   : > { %s3700_s26 = scalar_lea.vmem %s3699_s22, 2048  ;;  %p3701_p7 = scmp.lt.s32.totalorder %s3948_s15, %s3699_s22 }
  0x2c   : > { %p3696_p12 = pnand %p3694_p0, %p3682_p5  ;;  %p3702_p1 = scmp.lt.s32.totalorder %s3700_s26, %s3693_s27 }
  0x2e   : > { %p3697_p3 = pneg %p3696_p12  ;;  %p3703_p13 = por %p3702_p1, %p3701_p7 }
  0x30   : > { %p3704_p6 = pnand %p3703_p13, %p3697_p3 }
  0x32   : > { %3707 = shalt.err (!%p3704_p6)
}
  0x33   : > { %s3799_s28 = smov 128   ;;  %s3800_s19 = smov 64  }
  0x34   : > { %s3801_s30 = smov 4   ;;  %p2905_p12 = scmp.ge.s32.totalorder %s3796_s23, 1 }
  0x35   : > { %3564 = dma.hbm_to_vmem [thread:$0]  (!%p3957_p2), %s3953_s17, 1024, %s3948_s15, %s3961_s29, %s3799_s28, %s3800_s19, %s3801_s30  }
  0x36   : > { %p371_p5 = scmp.lt.s32.totalorder %s3796_s23, 3 }
  0x38   : > { %p372_p8 = pnand %p2905_p12, %p371_p5 }
  0x39   : > { %s377_s22 = sand.u32 (!%p372_p8), 1, %s3788_s21   ;;  %p4636_p6 = scmp.ne.s32.totalorder (!%p372_p8), %s4630_s13, 0 }
  0x3a   : > { %375 = sbr.rel (%p372_p8) target bundleno = 4047 (0xfcf), region = 64  ;;  %s2906_s12 = sshll.u32 (!%p372_p8), %s377_s22, 6 }
  0x3b   : > { %s378_s14 = scalar_lea.sflag (!%p372_p8), [#allocation3], %s377_s22  ;;  %s3985_s27 = scalar_lea.vmem (!%p372_p8), [#allocation2], %s2906_s12 }
  0x3f   : > { %3763 = dma.done.wait (%p4636_p6), %s378_s14, 1024  }
  0x40   : > { %3765 = vsyncadd (%p4636_p6), %s378_s14, 4294966272  ;;  %s2908_s25 = sshll.u32 %s3901_s24, 4  ;;  %v3634_v0 = vld [vmem:[%s4606_s2 + $0x8] sm:$0xff]   ;;  %v3635_v1 = vld [vmem:[%s4606_s2] sm:$0xff]   ;;  %vm521_vm0 = vcmask 261120   ;;  %s3802_s26 = smov 32  }
  0x41   : > { %p427_p13 = scmp.lt.s32.totalorder %s2908_s25, 31  ;;  %3209 = vmatprep.subr.bf16.mxu0 %v3634_v0  ;;  %v4010_v10 = vld [vmem:[%s3985_s27] sm:$0xff]   ;;  %v3652_v11 = vld [vmem:[%s4608_s4 + $0x8] sm:$0xff]   ;;  %v4023_v38 = vld [vmem:[%s3985_s27 + $0x10] sm:$0xff]   ;;  %vm3804_vm1 = vmmov 0   ;;  %vm2539_vm2 = vcmask 523520  }
  0x42   : > { %3210 = vmatpush3.bf16.msra.mxu0 %v3634_v0  ;;  %3245 = vmatprep.mubr.bf16.mxu1 %v4010_v10  ;;  %v3653_v12 = vld [vmem:[%s4608_s4] sm:$0xff]   ;;  %v4020_v37 = vld [vmem:[%s3985_s27 + $0x8] sm:$0xff]   ;;  %v4028_v39 = vld [vmem:[%s3985_s27 + $0x18] sm:$0xff]   ;;  %vm2647_vm3 = vcmask 1041409   ;;  %vm2649_vm4 = vcmask 1042434   ;;  %vm2651_vm5 = vcmask 1043459  }
  0x43   : > { %s4652_s25 = smov (!%p427_p13, %s2908_s25), 31  ;;  %3211 = vmatprep.subr.bf16.mxu0 %v3635_v1  ;;  %v4031_v40 = vld [vmem:[%s3985_s27 + $0x20] sm:$0xff]   ;;  %v4036_v41 = vld [vmem:[%s3985_s27 + $0x28] sm:$0xff]   ;;  %v4039_v42 = vld [vmem:[%s3985_s27 + $0x30] sm:$0xff]   ;;  %vm2653_vm6 = vcmask 1044484   ;;  %vm2655_vm7 = vcmask 1045509  }
  0x44   : > { %s2909_s17 = sshll.u32 %s4652_s25, 2  ;;  %v4044_v43 = vld [vmem:[%s3985_s27 + $0x38] sm:$0xff]   ;;  %v2928_v46 = vld [vmem:[%s4607_s3] ss:$0 sm:$0xff]  ;;  %vm2657_vm8 = vcmask 1046534   ;;  %vm2659_vm9 = vcmask 1047559  }
  0x45   : > { %s430_s29 = scalar_lea.vmem %s4605_s1, %s2909_s17  ;;  %s3805_s15 = smov 96  }
  0x46   : > { %v3636_v2 = vld [vmem:[%s430_s29] sm:$0xff]   ;;  %v3637_v3 = vld [vmem:[%s430_s29 + $0x8] sm:$0xff]   ;;  %3212 = vmatpush3.bf16.msra.mxu0 %v3635_v1  ;;  %v3638_v4 = vld [vmem:[%s430_s29 + $0x10] sm:$0xff]   ;;  %s422_s19 = sand.u32 1, %s3776_s18   ;;  %s3033_s13 = sshll.u32 %s3901_s24, 7 }
  0x47   : > { %3213 = vmatprep.mubr.msk.bf16.mxu0 %vm521_vm0, %v3636_v2  ;;  %v3639_v5 = vld [vmem:[%s430_s29 + $0x18] sm:$0xff]   ;;  %v3640_v6 = vld [vmem:[%s430_s29 + $0x20] sm:$0xff]   ;;  %v3641_v7 = vld [vmem:[%s430_s29 + $0x28] sm:$0xff]   ;;  %3261 = vmatprep.subr.bf16.mxu0 %v3652_v11  ;;  %s2907_s30 = sshll.u32 %s422_s19, 3  ;;  %s2812_s25 = scalar_lea.hbm %s4615_s11, %s3033_s13 }
  0x48   : > { %v3642_v8 = vld [vmem:[%s430_s29 + $0x30] sm:$0xff]   ;;  %v3643_v9 = vld [vmem:[%s430_s29 + $0x38] sm:$0xff]   ;;  %s424_s22 = scalar_lea.vmem [#allocation5], %s2907_s30  ;;  %s2801_s17 = scalar_lea.sflag [#allocation4], %s422_s19 }
  0x49   : > { %3214 = vmatmul.mubr.msk.bf16.vlgmr.msra.gmra.mxu0 %vm521_vm0, %v3637_v3  ;;  %s2814_s12 = sshll.u32 %s424_s22, 4  ;;  %p4637_p2 = scmp.ne.s32.totalorder %s4632_s16, 0  ;;  %s2815_s12 = int_to_ptr.vmem [resolvable:$true] %s2814_s12 }
  0x4a   : > { %3217 = vmatprep.mubr.msk.bf16.mxu0 %vm521_vm0, %v3638_v4  ;;  %3262 = vmatpush3.bf16.msra.mxu0 %v3652_v11  ;;  %s3806_s20 = smov [#allocation5]  }
  0x4b   : > { %3263 = vmatprep.subr.bf16.mxu0 %v3653_v12  ;;  %s3712_s29 = sshll.u32 %s3806_s20, 4  ;;  %s3713_s29 = int_to_ptr.vmem [resolvable:$false] %s3712_s29 }
  0x4c   : > { %s3714_s24 = scalar_lea.vmem %s3713_s29, 256  ;;  %p3715_p10 = scmp.lt.s32.totalorder %s2815_s12, %s3713_s29 }
  0x4e   : > { %3264 = vmatpush3.bf16.msra.mxu0 %v3653_v12 }
  0x51   : > { %3218 = vmatmul.mubr.msk.bf16.gmra.mxu0 %vm521_vm0, %v3639_v5 }
  0x52   : > { %3221 = vmatprep.mubr.msk.bf16.mxu0 %vm521_vm0, %v3640_v6 }
  0x59   : > { %3222 = vmatmul.mubr.msk.bf16.gmra.mxu0 %vm521_vm0, %v3641_v7 }
  0x5a   : > { %3225 = vmatprep.mubr.msk.bf16.mxu0 %vm521_vm0, %v3642_v8 }
  0x61   : > { %3226 = vmatmul.mubr.msk.bf16.gmra.mxu0 %vm521_vm0, %v3643_v9 }
 0x109   : > { %v3215_v13 = vpop.f32.mrf.mxu0 }
 0x10b   : > { %v580_v14 = vpop.f32.mrf.mxu0 }
 0x10d   : > { %v3216_v15 = vpop.f32.mrf.mxu0 }
 0x10e   : > { %v644_v35 = vpack.c.bf16 %v3216_v15, %v3215_v13 }
 0x10f   : > { %v583_v16 = vpop.f32.mrf.mxu0 }
 0x110   : > { %v643_v36 = vpack.c.bf16 %v583_v16, %v580_v14 }
 0x111   : > { %v3219_v17 = vpop.f32.mrf.mxu0 }
 0x113   : > { %v596_v18 = vpop.f32.mrf.mxu0 }
 0x115   : > { %v3220_v19 = vpop.f32.mrf.mxu0 }
 0x116   : > { %v646_v33 = vpack.c.bf16 %v3220_v19, %v3219_v17 }
 0x117   : > { %v599_v20 = vpop.f32.mrf.mxu0 }
 0x118   : > { %v645_v34 = vpack.c.bf16 %v599_v20, %v596_v18 }
 0x119   : > { %v3223_v21 = vpop.f32.mrf.mxu0 }
 0x11b   : > { %v612_v22 = vpop.f32.mrf.mxu0 }
 0x11d   : > { %v3224_v23 = vpop.f32.mrf.mxu0 }
 0x11e   : > { %v648_v31 = vpack.c.bf16 %v3224_v23, %v3223_v21 }
 0x11f   : > { %v615_v24 = vpop.f32.mrf.mxu0 }
 0x120   : > { %v647_v32 = vpack.c.bf16 %v615_v24, %v612_v22 }
 0x121   : > { %v3227_v25 = vpop.f32.mrf.mxu0 }
 0x123   : > { %v628_v26 = vpop.f32.mrf.mxu0 }
 0x125   : > { %v3228_v27 = vpop.f32.mrf.mxu0 }
 0x126   : > { %v650_v28 = vpack.c.bf16 %v3228_v27, %v3227_v25 }
 0x127   : > { %v631_v29 = vpop.f32.mrf.mxu0 }
 0x128   : > { %v649_v30 = vpack.c.bf16 %v631_v29, %v628_v26  ;;  %3229 = vmatprep.subr.bf16.mxu1 %v650_v28 }
 0x129   : > { %3230 = vmatpush3.bf16.msra.mxu1 %v650_v28 }
 0x12a   : > { %3231 = vmatprep.subr.bf16.mxu1 %v649_v30 }
 0x12d   : > { %3232 = vmatpush3.bf16.msra.mxu1 %v649_v30 }
 0x12e   : > { %3233 = vmatprep.subr.bf16.mxu1 %v648_v31 }
 0x131   : > { %3234 = vmatpush3.bf16.msra.mxu1 %v648_v31 }
 0x132   : > { %3235 = vmatprep.subr.bf16.mxu1 %v647_v32 }
 0x135   : > { %3236 = vmatpush3.bf16.msra.mxu1 %v647_v32 }
 0x136   : > { %3237 = vmatprep.subr.bf16.mxu1 %v646_v33 }
 0x139   : > { %3238 = vmatpush3.bf16.msra.mxu1 %v646_v33 }
 0x13a   : > { %3239 = vmatprep.subr.bf16.mxu1 %v645_v34 }
 0x13d   : > { %3240 = vmatpush3.bf16.msra.mxu1 %v645_v34 }
 0x13e   : > { %3241 = vmatprep.subr.bf16.mxu1 %v644_v35 }
 0x141   : > { %3242 = vmatpush3.bf16.msra.mxu1 %v644_v35 }
 0x142   : > { %3243 = vmatprep.subr.bf16.mxu1 %v643_v36 }
 0x145   : > { %3244 = vmatpush3.bf16.msra.mxu1 %v643_v36 }
 0x148   : > { %3246 = vmatmul.mubr.bf16.vlgmr.msra.gmra.mxu1 %v4020_v37 }
 0x149   : > { %3249 = vmatprep.mubr.bf16.mxu1 %v4023_v38 }
 0x150   : > { %3250 = vmatmul.mubr.bf16.gmra.mxu1 %v4028_v39 }
 0x151   : > { %3253 = vmatprep.mubr.bf16.mxu1 %v4031_v40 }
 0x158   : > { %3254 = vmatmul.mubr.bf16.gmra.mxu1 %v4036_v41 }
 0x159   : > { %3257 = vmatprep.mubr.bf16.mxu1 %v4039_v42 }
 0x160   : > { %3258 = vmatmul.mubr.bf16.gmra.mxu1 %v4044_v43 }
 0x161   : > { %3297 = vmatprep.mubr.bf16.mxu1 %v4010_v10 }
 0x208   : > { %v3247_v44 = vpop.f32.mrf.mxu1 }
 0x209   : > { %v749_v50 = vadd.f32 %v3247_v44, %v2928_v46 }
 0x20a   : > { %v740_v45 = vpop.f32.mrf.mxu1 }
 0x20b   : > { %v741_v48 = vadd.f32 %v2928_v46, %v740_v45  ;;  %v805_v57 = vmax.f32 %v749_v50, 0.0  ;;  %v3654_v45 = vld [vmem:[%s4608_s4 + $0x18] sm:$0xff]  }
 0x20c   : > { %v3248_v47 = vpop.f32.mrf.mxu1  ;;  %3313 = vmatprep.subr.bf16.mxu0 %v3654_v45 }
 0x20d   : > { %v752_v49 = vadd.f32 %v3248_v47, %v2928_v46  ;;  %v803_v55 = vmax.f32 %v741_v48, 0.0  ;;  %v3655_v47 = vld [vmem:[%s4608_s4 + $0x10] sm:$0xff]  }
 0x20e   : > { %v743_v51 = vpop.f32.mrf.mxu1 }
 0x20f   : > { %v744_v52 = vadd.f32 %v2928_v46, %v743_v51  ;;  %v806_v53 = vmax.f32 %v752_v49, 0.0 }
 0x210   : > { %v3251_v54 = vpop.f32.mrf.mxu1 }
 0x211   : > { %v804_v56 = vmax.f32 %v744_v52, 0.0  ;;  %v820_v60 = vpack.c.bf16 %v806_v53, %v805_v57  ;;  %v765_v0 = vadd.f32 %v3251_v54, %v2928_v46 }
 0x212   : > { %v756_v58 = vpop.f32.mrf.mxu1 }
 0x213   : > { %v819_v59 = vpack.c.bf16 %v804_v56, %v803_v55  ;;  %v757_v62 = vadd.f32 %v2928_v46, %v756_v58  ;;  %v809_v7 = vmax.f32 %v765_v0, 0.0 }
 0x214   : > { %v3252_v61 = vpop.f32.mrf.mxu1 }
 0x215   : > { %v768_v63 = vadd.f32 %v3252_v61, %v2928_v46  ;;  %3265 = vmatprep.mubr.msk.bf16.mxu0 %vm521_vm0, %v819_v59  ;;  %v807_v5 = vmax.f32 %v757_v62, 0.0 }
 0x216   : > { %v759_v1 = vpop.f32.mrf.mxu1  ;;  %3266 = vmatmul.mubr.msk.bf16.vlgmr.msra.gmra.mxu0 %vm521_vm0, %v820_v60 }
 0x217   : > { %v760_v2 = vadd.f32 %v2928_v46, %v759_v1  ;;  %v810_v3 = vmax.f32 %v768_v63, 0.0  ;;  %3314 = vmatpush3.bf16.msra.mxu0 %v3654_v45 }
 0x218   : > { %v3255_v4 = vpop.f32.mrf.mxu1  ;;  %3315 = vmatprep.subr.bf16.mxu0 %v3655_v47 }
 0x219   : > { %v808_v6 = vmax.f32 %v760_v2, 0.0  ;;  %v822_v11 = vpack.c.bf16 %v810_v3, %v809_v7  ;;  %v781_v15 = vadd.f32 %v3255_v4, %v2928_v46 }
 0x21a   : > { %v772_v8 = vpop.f32.mrf.mxu1 }
 0x21b   : > { %v821_v9 = vpack.c.bf16 %v808_v6, %v807_v5  ;;  %v773_v13 = vadd.f32 %v2928_v46, %v772_v8  ;;  %v813_v22 = vmax.f32 %v781_v15, 0.0  ;;  %3316 = vmatpush3.bf16.msra.mxu0 %v3655_v47 }
 0x21c   : > { %v3256_v12 = vpop.f32.mrf.mxu1 }
 0x21d   : > { %v784_v14 = vadd.f32 %v3256_v12, %v2928_v46  ;;  %3269 = vmatprep.mubr.msk.bf16.mxu0 %vm521_vm0, %v821_v9  ;;  %v811_v20 = vmax.f32 %v773_v13, 0.0  ;;  %v2948_v9 = vld [vmem:[%s4607_s3 + $0x1] ss:$0 sm:$0xff] }
 0x21e   : > { %v775_v16 = vpop.f32.mrf.mxu1  ;;  %3270 = vmatmul.mubr.msk.bf16.gmra.mxu0 %vm521_vm0, %v822_v11 }
 0x21f   : > { %v776_v17 = vadd.f32 %v2928_v46, %v775_v16  ;;  %v814_v18 = vmax.f32 %v784_v14, 0.0 }
 0x220   : > { %v3259_v19 = vpop.f32.mrf.mxu1 }
 0x221   : > { %v812_v21 = vmax.f32 %v776_v17, 0.0  ;;  %v824_v25 = vpack.c.bf16 %v814_v18, %v813_v22  ;;  %v797_v29 = vadd.f32 %v3259_v19, %v2928_v46 }
 0x222   : > { %v788_v23 = vpop.f32.mrf.mxu1 }
 0x223   : > { %v823_v24 = vpack.c.bf16 %v812_v21, %v811_v20  ;;  %v789_v27 = vadd.f32 %v2928_v46, %v788_v23  ;;  %v817_v35 = vmax.f32 %v797_v29, 0.0 }
 0x224   : > { %v3260_v26 = vpop.f32.mrf.mxu1 }
 0x225   : > { %v800_v28 = vadd.f32 %v3260_v26, %v2928_v46  ;;  %3273 = vmatprep.mubr.msk.bf16.mxu0 %vm521_vm0, %v823_v24  ;;  %v815_v33 = vmax.f32 %v789_v27, 0.0 }
 0x226   : > { %v791_v30 = vpop.f32.mrf.mxu1  ;;  %3274 = vmatmul.mubr.msk.bf16.gmra.mxu0 %vm521_vm0, %v824_v25 }
 0x227   : > { %v792_v31 = vadd.f32 %v2928_v46, %v791_v30  ;;  %v818_v32 = vmax.f32 %v800_v28, 0.0 }
 0x229   : > { %v816_v34 = vmax.f32 %v792_v31, 0.0  ;;  %v826_v44 = vpack.c.bf16 %v818_v32, %v817_v35 }
 0x22b   : > { %v825_v36 = vpack.c.bf16 %v816_v34, %v815_v33 }
 0x22d   : > { %3277 = vmatprep.mubr.msk.bf16.mxu0 %vm521_vm0, %v825_v36 }
 0x22e   : > { %3278 = vmatmul.mubr.msk.bf16.gmra.mxu0 %vm521_vm0, %v826_v44 }
 0x2d6   : > { %v4065_v46 = vpop.f32.mrf.mxu0 }
 0x2d8   : > { %v4067_v48 = vpop.f32.mrf.mxu0 }
 0x2da   : > { %v4069_v49 = vpop.f32.mrf.mxu0 }
 0x2db   : > { %v981_v5 = vpack.c.bf16 %v4069_v49, %v4065_v46 }
 0x2dc   : > { %v4071_v50 = vpop.f32.mrf.mxu0 }
 0x2dd   : > { %v980_v6 = vpack.c.bf16 %v4071_v50, %v4067_v48 }
 0x2de   : > { %v4073_v51 = vpop.f32.mrf.mxu0 }
 0x2e0   : > { %v4075_v52 = vpop.f32.mrf.mxu0 }
 0x2e2   : > { %v4077_v53 = vpop.f32.mrf.mxu0 }
 0x2e3   : > { %v983_v3 = vpack.c.bf16 %v4077_v53, %v4073_v51 }
 0x2e4   : > { %v4079_v54 = vpop.f32.mrf.mxu0 }
 0x2e5   : > { %v982_v4 = vpack.c.bf16 %v4079_v54, %v4075_v52 }
 0x2e6   : > { %v4081_v55 = vpop.f32.mrf.mxu0 }
 0x2e8   : > { %v4083_v56 = vpop.f32.mrf.mxu0 }
 0x2ea   : > { %v4085_v57 = vpop.f32.mrf.mxu0 }
 0x2eb   : > { %v985_v1 = vpack.c.bf16 %v4085_v57, %v4081_v55 }
 0x2ec   : > { %v4087_v58 = vpop.f32.mrf.mxu0 }
 0x2ed   : > { %v984_v2 = vpack.c.bf16 %v4087_v58, %v4083_v56 }
 0x2ee   : > { %v4089_v59 = vpop.f32.mrf.mxu0 }
 0x2f0   : > { %v4091_v60 = vpop.f32.mrf.mxu0 }
 0x2f2   : > { %v4093_v61 = vpop.f32.mrf.mxu0 }
 0x2f3   : > { %v987_v62 = vpack.c.bf16 %v4093_v61, %v4089_v59 }
 0x2f4   : > { %v4097_v63 = vpop.f32.mrf.mxu0 }
 0x2f5   : > { %v986_v0 = vpack.c.bf16 %v4097_v63, %v4091_v60  ;;  %3281 = vmatprep.subr.bf16.mxu1 %v987_v62 }
 0x2f6   : > { %3282 = vmatpush3.bf16.msra.mxu1 %v987_v62 }
 0x2f7   : > { %3283 = vmatprep.subr.bf16.mxu1 %v986_v0 }
 0x2fa   : > { %3284 = vmatpush3.bf16.msra.mxu1 %v986_v0 }
 0x2fb   : > { %3285 = vmatprep.subr.bf16.mxu1 %v985_v1 }
 0x2fe   : > { %3286 = vmatpush3.bf16.msra.mxu1 %v985_v1 }
 0x2ff   : > { %3287 = vmatprep.subr.bf16.mxu1 %v984_v2 }
 0x302   : > { %3288 = vmatpush3.bf16.msra.mxu1 %v984_v2 }
 0x303   : > { %3289 = vmatprep.subr.bf16.mxu1 %v983_v3 }
 0x306   : > { %3290 = vmatpush3.bf16.msra.mxu1 %v983_v3 }
 0x307   : > { %3291 = vmatprep.subr.bf16.mxu1 %v982_v4 }
 0x30a   : > { %3292 = vmatpush3.bf16.msra.mxu1 %v982_v4 }
 0x30b   : > { %3293 = vmatprep.subr.bf16.mxu1 %v981_v5 }
 0x30e   : > { %3294 = vmatpush3.bf16.msra.mxu1 %v981_v5 }
 0x30f   : > { %3295 = vmatprep.subr.bf16.mxu1 %v980_v6 }
 0x312   : > { %3296 = vmatpush3.bf16.msra.mxu1 %v980_v6 }
 0x315   : > { %3298 = vmatmul.mubr.bf16.vlgmr.msra.gmra.mxu1 %v4020_v37 }
 0x316   : > { %3301 = vmatprep.mubr.bf16.mxu1 %v4023_v38 }
 0x31d   : > { %3302 = vmatmul.mubr.bf16.gmra.mxu1 %v4028_v39 }
 0x31e   : > { %3305 = vmatprep.mubr.bf16.mxu1 %v4031_v40 }
 0x325   : > { %3306 = vmatmul.mubr.bf16.gmra.mxu1 %v4036_v41 }
 0x326   : > { %3309 = vmatprep.mubr.bf16.mxu1 %v4039_v42 }
 0x32d   : > { %3310 = vmatmul.mubr.bf16.gmra.mxu1 %v4044_v43 }
 0x32e   : > { %3349 = vmatprep.mubr.bf16.mxu1 %v4010_v10 }
 0x3d5   : > { %v3299_v7 = vpop.f32.mrf.mxu1 }
 0x3d6   : > { %v1039_v14 = vadd.f32 %v3299_v7, %v2948_v9 }
 0x3d7   : > { %v1030_v8 = vpop.f32.mrf.mxu1 }
 0x3d8   : > { %v1031_v12 = vadd.f32 %v2948_v9, %v1030_v8  ;;  %v1095_v21 = vmax.f32 %v1039_v14, 0.0 }
 0x3d9   : > { %v3300_v11 = vpop.f32.mrf.mxu1 }
 0x3da   : > { %v1042_v13 = vadd.f32 %v3300_v11, %v2948_v9  ;;  %v1093_v19 = vmax.f32 %v1031_v12, 0.0 }
 0x3db   : > { %v1033_v15 = vpop.f32.mrf.mxu1 }
 0x3dc   : > { %v1034_v16 = vadd.f32 %v2948_v9, %v1033_v15  ;;  %v1096_v17 = vmax.f32 %v1042_v13, 0.0 }
 0x3dd   : > { %v3303_v18 = vpop.f32.mrf.mxu1 }
 0x3de   : > { %v1094_v20 = vmax.f32 %v1034_v16, 0.0  ;;  %v1110_v24 = vpack.c.bf16 %v1096_v17, %v1095_v21  ;;  %v1055_v28 = vadd.f32 %v3303_v18, %v2948_v9 }
 0x3df   : > { %v1046_v22 = vpop.f32.mrf.mxu1 }
 0x3e0   : > { %v1109_v23 = vpack.c.bf16 %v1094_v20, %v1093_v19  ;;  %v1047_v26 = vadd.f32 %v2948_v9, %v1046_v22  ;;  %v1099_v35 = vmax.f32 %v1055_v28, 0.0 }
 0x3e1   : > { %v3304_v25 = vpop.f32.mrf.mxu1 }
 0x3e2   : > { %v1058_v27 = vadd.f32 %v3304_v25, %v2948_v9  ;;  %3317 = vmatprep.mubr.msk.bf16.mxu0 %vm521_vm0, %v1109_v23  ;;  %v1097_v33 = vmax.f32 %v1047_v26, 0.0  ;;  %v3656_v26 = vld [vmem:[%s4608_s4 + $0x28] sm:$0xff]  }
 0x3e3   : > { %v1049_v29 = vpop.f32.mrf.mxu1  ;;  %3318 = vmatmul.mubr.msk.bf16.vlgmr.msra.gmra.mxu0 %vm521_vm0, %v1110_v24  ;;  %3365 = vmatprep.subr.bf16.mxu0 %v3656_v26 }
 0x3e4   : > { %v1050_v30 = vadd.f32 %v2948_v9, %v1049_v29  ;;  %v1100_v31 = vmax.f32 %v1058_v27, 0.0  ;;  %v3657_v27 = vld [vmem:[%s4608_s4 + $0x20] sm:$0xff]   ;;  %3366 = vmatpush3.bf16.msra.mxu0 %v3656_v26 }
 0x3e5   : > { %v3307_v32 = vpop.f32.mrf.mxu1  ;;  %3367 = vmatprep.subr.bf16.mxu0 %v3657_v27 }
 0x3e6   : > { %v1098_v34 = vmax.f32 %v1050_v30, 0.0  ;;  %v1112_v45 = vpack.c.bf16 %v1100_v31, %v1099_v35  ;;  %v1071_v1 = vadd.f32 %v3307_v32, %v2948_v9 }
 0x3e7   : > { %v1062_v36 = vpop.f32.mrf.mxu1 }
 0x3e8   : > { %v1111_v44 = vpack.c.bf16 %v1098_v34, %v1097_v33  ;;  %v1063_v62 = vadd.f32 %v2948_v9, %v1062_v36  ;;  %v1103_v8 = vmax.f32 %v1071_v1, 0.0  ;;  %3368 = vmatpush3.bf16.msra.mxu0 %v3657_v27 }
 0x3e9   : > { %v3308_v47 = vpop.f32.mrf.mxu1 }
 0x3ea   : > { %v1074_v0 = vadd.f32 %v3308_v47, %v2948_v9  ;;  %3321 = vmatprep.mubr.msk.bf16.mxu0 %vm521_vm0, %v1111_v44  ;;  %v1101_v6 = vmax.f32 %v1063_v62, 0.0 }
 0x3eb   : > { %v1065_v2 = vpop.f32.mrf.mxu1  ;;  %3322 = vmatmul.mubr.msk.bf16.gmra.mxu0 %vm521_vm0, %v1112_v45 }
 0x3ec   : > { %v1066_v3 = vadd.f32 %v2948_v9, %v1065_v2  ;;  %v1104_v4 = vmax.f32 %v1074_v0, 0.0 }
 0x3ed   : > { %v3311_v5 = vpop.f32.mrf.mxu1 }
 0x3ee   : > { %v1102_v7 = vmax.f32 %v1066_v3, 0.0  ;;  %v1114_v13 = vpack.c.bf16 %v1104_v4, %v1103_v8  ;;  %v1087_v17 = vadd.f32 %v3311_v5, %v2948_v9 }
 0x3ef   : > { %v1078_v11 = vpop.f32.mrf.mxu1 }
 0x3f0   : > { %v1113_v12 = vpack.c.bf16 %v1102_v7, %v1101_v6  ;;  %v1079_v15 = vadd.f32 %v2948_v9, %v1078_v11  ;;  %v1107_v23 = vmax.f32 %v1087_v17, 0.0 }
 0x3f1   : > { %v3312_v14 = vpop.f32.mrf.mxu1 }
 0x3f2   : > { %v1090_v16 = vadd.f32 %v3312_v14, %v2948_v9  ;;  %3325 = vmatprep.mubr.msk.bf16.mxu0 %vm521_vm0, %v1113_v12  ;;  %v1105_v21 = vmax.f32 %v1079_v15, 0.0  ;;  %v2964_v14 = vld [vmem:[%s4607_s3 + $0x2] ss:$0 sm:$0xff] }
 0x3f3   : > { %v1081_v18 = vpop.f32.mrf.mxu1  ;;  %3326 = vmatmul.mubr.msk.bf16.gmra.mxu0 %vm521_vm0, %v1114_v13 }
 0x3f4   : > { %v1082_v19 = vadd.f32 %v2948_v9, %v1081_v18  ;;  %v1108_v20 = vmax.f32 %v1090_v16, 0.0 }
 0x3f6   : > { %v1106_v22 = vmax.f32 %v1082_v19, 0.0  ;;  %v1116_v25 = vpack.c.bf16 %v1108_v20, %v1107_v23 }
 0x3f8   : > { %v1115_v24 = vpack.c.bf16 %v1106_v22, %v1105_v21 }
 0x3fa   : > { %3329 = vmatprep.mubr.msk.bf16.mxu0 %vm521_vm0, %v1115_v24 }
 0x3fb   : > { %3330 = vmatmul.mubr.msk.bf16.gmra.mxu0 %vm521_vm0, %v1116_v25 }
 0x4a3   : > { %v4138_v9 = vpop.f32.mrf.mxu0 }
 0x4a5   : > { %v4140_v28 = vpop.f32.mrf.mxu0 }
 0x4a7   : > { %v4142_v29 = vpop.f32.mrf.mxu0 }
 0x4a8   : > { %v1272_v8 = vpack.c.bf16 %v4142_v29, %v4138_v9 }
 0x4a9   : > { %v4144_v30 = vpop.f32.mrf.mxu0 }
 0x4aa   : > { %v1271_v11 = vpack.c.bf16 %v4144_v30, %v4140_v28 }
 0x4ab   : > { %v4146_v31 = vpop.f32.mrf.mxu0 }
 0x4ad   : > { %v4148_v32 = vpop.f32.mrf.mxu0 }
 0x4af   : > { %v4150_v33 = vpop.f32.mrf.mxu0 }
 0x4b0   : > { %v1274_v6 = vpack.c.bf16 %v4150_v33, %v4146_v31 }
 0x4b1   : > { %v4152_v34 = vpop.f32.mrf.mxu0 }
 0x4b2   : > { %v1273_v7 = vpack.c.bf16 %v4152_v34, %v4148_v32 }
 0x4b3   : > { %v4154_v35 = vpop.f32.mrf.mxu0 }
 0x4b5   : > { %v4156_v36 = vpop.f32.mrf.mxu0 }
 0x4b7   : > { %v4158_v44 = vpop.f32.mrf.mxu0 }
 0x4b8   : > { %v1276_v4 = vpack.c.bf16 %v4158_v44, %v4154_v35 }
 0x4b9   : > { %v4160_v45 = vpop.f32.mrf.mxu0 }
 0x4ba   : > { %v1275_v5 = vpack.c.bf16 %v4160_v45, %v4156_v36 }
 0x4bb   : > { %v4162_v47 = vpop.f32.mrf.mxu0 }
 0x4bd   : > { %v4164_v62 = vpop.f32.mrf.mxu0 }
 0x4bf   : > { %v4166_v0 = vpop.f32.mrf.mxu0 }
 0x4c0   : > { %v1278_v1 = vpack.c.bf16 %v4166_v0, %v4162_v47 }
 0x4c1   : > { %v4170_v2 = vpop.f32.mrf.mxu0 }
 0x4c2   : > { %v1277_v3 = vpack.c.bf16 %v4170_v2, %v4164_v62  ;;  %3333 = vmatprep.subr.bf16.mxu1 %v1278_v1 }
 0x4c3   : > { %3334 = vmatpush3.bf16.msra.mxu1 %v1278_v1 }
 0x4c4   : > { %3335 = vmatprep.subr.bf16.mxu1 %v1277_v3 }
 0x4c7   : > { %3336 = vmatpush3.bf16.msra.mxu1 %v1277_v3 }
 0x4c8   : > { %3337 = vmatprep.subr.bf16.mxu1 %v1276_v4 }
 0x4cb   : > { %3338 = vmatpush3.bf16.msra.mxu1 %v1276_v4 }
 0x4cc   : > { %3339 = vmatprep.subr.bf16.mxu1 %v1275_v5 }
 0x4cf   : > { %3340 = vmatpush3.bf16.msra.mxu1 %v1275_v5 }
 0x4d0   : > { %3341 = vmatprep.subr.bf16.mxu1 %v1274_v6 }
 0x4d3   : > { %3342 = vmatpush3.bf16.msra.mxu1 %v1274_v6 }
 0x4d4   : > { %3343 = vmatprep.subr.bf16.mxu1 %v1273_v7 }
 0x4d7   : > { %3344 = vmatpush3.bf16.msra.mxu1 %v1273_v7 }
 0x4d8   : > { %3345 = vmatprep.subr.bf16.mxu1 %v1272_v8 }
 0x4db   : > { %3346 = vmatpush3.bf16.msra.mxu1 %v1272_v8 }
 0x4dc   : > { %3347 = vmatprep.subr.bf16.mxu1 %v1271_v11 }
 0x4df   : > { %3348 = vmatpush3.bf16.msra.mxu1 %v1271_v11 }
 0x4e2   : > { %3350 = vmatmul.mubr.bf16.vlgmr.msra.gmra.mxu1 %v4020_v37 }
 0x4e3   : > { %3353 = vmatprep.mubr.bf16.mxu1 %v4023_v38 }
 0x4ea   : > { %3354 = vmatmul.mubr.bf16.gmra.mxu1 %v4028_v39 }
 0x4eb   : > { %3357 = vmatprep.mubr.bf16.mxu1 %v4031_v40 }
 0x4f2   : > { %3358 = vmatmul.mubr.bf16.gmra.mxu1 %v4036_v41 }
 0x4f3   : > { %3361 = vmatprep.mubr.bf16.mxu1 %v4039_v42 }
 0x4fa   : > { %3362 = vmatmul.mubr.bf16.gmra.mxu1 %v4044_v43 }
 0x4fb   : > { %3401 = vmatprep.mubr.bf16.mxu1 %v4010_v10 }
 0x5a2   : > { %v3351_v12 = vpop.f32.mrf.mxu1 }
 0x5a3   : > { %v1330_v18 = vadd.f32 %v3351_v12, %v2964_v14 }
 0x5a4   : > { %v1321_v13 = vpop.f32.mrf.mxu1 }
 0x5a5   : > { %v1322_v16 = vadd.f32 %v2964_v14, %v1321_v13  ;;  %v1386_v25 = vmax.f32 %v1330_v18, 0.0 }
 0x5a6   : > { %v3352_v15 = vpop.f32.mrf.mxu1 }
 0x5a7   : > { %v1333_v17 = vadd.f32 %v3352_v15, %v2964_v14  ;;  %v1384_v23 = vmax.f32 %v1322_v16, 0.0 }
 0x5a8   : > { %v1324_v19 = vpop.f32.mrf.mxu1 }
 0x5a9   : > { %v1325_v20 = vadd.f32 %v2964_v14, %v1324_v19  ;;  %v1387_v21 = vmax.f32 %v1333_v17, 0.0 }
 0x5aa   : > { %v3355_v22 = vpop.f32.mrf.mxu1 }
 0x5ab   : > { %v1385_v24 = vmax.f32 %v1325_v20, 0.0  ;;  %v1401_v1 = vpack.c.bf16 %v1387_v21, %v1386_v25  ;;  %v1346_v6 = vadd.f32 %v3355_v22, %v2964_v14 }
 0x5ac   : > { %v1337_v26 = vpop.f32.mrf.mxu1 }
 0x5ad   : > { %v1400_v27 = vpack.c.bf16 %v1385_v24, %v1384_v23  ;;  %v1338_v4 = vadd.f32 %v2964_v14, %v1337_v26  ;;  %v1390_v16 = vmax.f32 %v1346_v6, 0.0 }
 0x5ae   : > { %v3356_v3 = vpop.f32.mrf.mxu1 }
 0x5af   : > { %v1349_v5 = vadd.f32 %v3356_v3, %v2964_v14  ;;  %3369 = vmatprep.mubr.msk.bf16.mxu0 %vm521_vm0, %v1400_v27  ;;  %v1388_v13 = vmax.f32 %v1338_v4, 0.0 }
 0x5b0   : > { %v1340_v7 = vpop.f32.mrf.mxu1  ;;  %3370 = vmatmul.mubr.msk.bf16.vlgmr.msra.gmra.mxu0 %vm521_vm0, %v1401_v1 }
 0x5b1   : > { %v1341_v8 = vadd.f32 %v2964_v14, %v1340_v7  ;;  %v1391_v11 = vmax.f32 %v1349_v5, 0.0 }
 0x5b2   : > { %v3359_v12 = vpop.f32.mrf.mxu1 }
 0x5b3   : > { %v1389_v15 = vmax.f32 %v1341_v8, 0.0  ;;  %v1403_v19 = vpack.c.bf16 %v1391_v11, %v1390_v16  ;;  %v1362_v24 = vadd.f32 %v3359_v12, %v2964_v14 }
 0x5b4   : > { %v1353_v17 = vpop.f32.mrf.mxu1 }
 0x5b5   : > { %v1402_v18 = vpack.c.bf16 %v1389_v15, %v1388_v13  ;;  %v1354_v21 = vadd.f32 %v2964_v14, %v1353_v17  ;;  %v1394_v4 = vmax.f32 %v1362_v24, 0.0  ;;  %v3658_v24 = vld [vmem:[%s4608_s4 + $0x38] sm:$0xff]  }
 0x5b6   : > { %v3360_v20 = vpop.f32.mrf.mxu1  ;;  %3417 = vmatprep.subr.bf16.mxu0 %v3658_v24 }
 0x5b7   : > { %v1365_v23 = vadd.f32 %v3360_v20, %v2964_v14  ;;  %3373 = vmatprep.mubr.msk.bf16.mxu0 %vm521_vm0, %v1402_v18  ;;  %v1392_v1 = vmax.f32 %v1354_v21, 0.0  ;;  %3418 = vmatpush3.bf16.msra.mxu0 %v3658_v24 }
 0x5b8   : > { %v1356_v25 = vpop.f32.mrf.mxu1  ;;  %3374 = vmatmul.mubr.msk.bf16.gmra.mxu0 %vm521_vm0, %v1403_v19 }
 0x5b9   : > { %v1357_v22 = vadd.f32 %v2964_v14, %v1356_v25  ;;  %v1395_v26 = vmax.f32 %v1365_v23, 0.0  ;;  %v3659_v25 = vld [vmem:[%s4608_s4 + $0x30] sm:$0xff]  }
 0x5ba   : > { %v3363_v27 = vpop.f32.mrf.mxu1  ;;  %3419 = vmatprep.subr.bf16.mxu0 %v3659_v25 }
 0x5bb   : > { %v1393_v3 = vmax.f32 %v1357_v22, 0.0  ;;  %v1405_v7 = vpack.c.bf16 %v1395_v26, %v1394_v4  ;;  %v1378_v15 = vadd.f32 %v3363_v27, %v2964_v14  ;;  %3420 = vmatpush3.bf16.msra.mxu0 %v3659_v25  ;;  %v1255_v26 = vadd.f32 %v4140_v28, %v4067_v48 }
 0x5bc   : > { %v1369_v5 = vpop.f32.mrf.mxu1  ;;  %v1259_v28 = vadd.f32 %v4148_v32, %v4075_v52  ;;  %v1263_v32 = vadd.f32 %v4156_v36, %v4083_v56  ;;  %v1267_v36 = vadd.f32 %v4164_v62, %v4091_v60 }
 0x5bd   : > { %v1404_v6 = vpack.c.bf16 %v1393_v3, %v1392_v1  ;;  %v1370_v11 = vadd.f32 %v2964_v14, %v1369_v5  ;;  %v1398_v20 = vmax.f32 %v1378_v15, 0.0  ;;  %v1258_v3 = vadd.f32 %v4142_v29, %v4069_v49 }
 0x5be   : > { %v3364_v8 = vpop.f32.mrf.mxu1  ;;  %v1262_v29 = vadd.f32 %v4150_v33, %v4077_v53  ;;  %v1266_v33 = vadd.f32 %v4158_v44, %v4085_v57  ;;  %v1270_v44 = vadd.f32 %v4166_v0, %v4093_v61 }
 0x5bf   : > { %v1381_v13 = vadd.f32 %v3364_v8, %v2964_v14  ;;  %3377 = vmatprep.mubr.msk.bf16.mxu0 %vm521_vm0, %v1404_v6  ;;  %v1396_v18 = vmax.f32 %v1370_v11, 0.0  ;;  %v1256_v6 = vadd.f32 %v4144_v30, %v4071_v50  ;;  %v1260_v30 = vadd.f32 %v4152_v34, %v4079_v54 }
 0x5c0   : > { %v1372_v16 = vpop.f32.mrf.mxu1  ;;  %3378 = vmatmul.mubr.msk.bf16.gmra.mxu0 %vm521_vm0, %v1405_v7  ;;  %v1264_v34 = vadd.f32 %v4160_v45, %v4087_v58 }
 0x5c1   : > { %v1373_v12 = vadd.f32 %v2964_v14, %v1372_v16  ;;  %v1399_v17 = vmax.f32 %v1381_v13, 0.0  ;;  %v1257_v14 = vadd.f32 %v4138_v9, %v4065_v46  ;;  %v1261_v46 = vadd.f32 %v4146_v31, %v4073_v51 }
 0x5c2   : > { %v1265_v31 = vadd.f32 %v4154_v35, %v4081_v55  ;;  %v1269_v35 = vadd.f32 %v4162_v47, %v4089_v59 }
 0x5c3   : > { %v1397_v19 = vmax.f32 %v1373_v12, 0.0  ;;  %v1407_v23 = vpack.c.bf16 %v1399_v17, %v1398_v20 }
 0x5c5   : > { %v1406_v21 = vpack.c.bf16 %v1397_v19, %v1396_v18 }
 0x5c7   : > { %3381 = vmatprep.mubr.msk.bf16.mxu0 %vm521_vm0, %v1406_v21 }
 0x5c8   : > { %3382 = vmatmul.mubr.msk.bf16.gmra.mxu0 %vm521_vm0, %v1407_v23 }
 0x670   : > { %v3371_v22 = vpop.f32.mrf.mxu0 }
 0x671   : > { %v4215_v27 = vadd.f32 %v3371_v22, %v1257_v14 }
 0x672   : > { %v1483_v1 = vpop.f32.mrf.mxu0 }
 0x673   : > { %v4219_v4 = vadd.f32 %v1483_v1, %v1255_v26 }
 0x674   : > { %v3372_v5 = vpop.f32.mrf.mxu0 }
 0x675   : > { %v4223_v7 = vadd.f32 %v3372_v5, %v1258_v3  ;;  %v1563_v0 = vpack.c.bf16 %v3372_v5, %v3371_v22 }
 0x676   : > { %v1486_v8 = vpop.f32.mrf.mxu0 }
 0x677   : > { %v4227_v9 = vadd.f32 %v1486_v8, %v1256_v6  ;;  %v1562_v25 = vpack.c.bf16 %v1486_v8, %v1483_v1 }
 0x678   : > { %v3375_v48 = vpop.f32.mrf.mxu0 }
 0x679   : > { %v4231_v11 = vadd.f32 %v3375_v48, %v1261_v46 }
 0x67a   : > { %v1499_v49 = vpop.f32.mrf.mxu0 }
 0x67b   : > { %v4235_v13 = vadd.f32 %v1499_v49, %v1259_v28 }
 0x67c   : > { %v3376_v50 = vpop.f32.mrf.mxu0 }
 0x67d   : > { %v4239_v15 = vadd.f32 %v3376_v50, %v1262_v29  ;;  %v1565_v61 = vpack.c.bf16 %v3376_v50, %v3375_v48 }
 0x67e   : > { %v1502_v51 = vpop.f32.mrf.mxu0 }
 0x67f   : > { %v4243_v16 = vadd.f32 %v1502_v51, %v1260_v30  ;;  %v1564_v62 = vpack.c.bf16 %v1502_v51, %v1499_v49 }
 0x680   : > { %v3379_v52 = vpop.f32.mrf.mxu0 }
 0x681   : > { %v4247_v12 = vadd.f32 %v3379_v52, %v1265_v31 }
 0x682   : > { %v1515_v53 = vpop.f32.mrf.mxu0 }
 0x683   : > { %v4251_v17 = vadd.f32 %v1515_v53, %v1263_v32 }
 0x684   : > { %v3380_v54 = vpop.f32.mrf.mxu0 }
 0x685   : > { %v4255_v18 = vadd.f32 %v3380_v54, %v1266_v33  ;;  %v1567_v60 = vpack.c.bf16 %v3380_v54, %v3379_v52 }
 0x686   : > { %v1518_v55 = vpop.f32.mrf.mxu0 }
 0x687   : > { %v4259_v19 = vadd.f32 %v1518_v55, %v1264_v34  ;;  %v1566_v47 = vpack.c.bf16 %v1518_v55, %v1515_v53 }
 0x688   : > { %v3383_v56 = vpop.f32.mrf.mxu0 }
 0x689   : > { %v4263_v20 = vadd.f32 %v3383_v56, %v1269_v35 }
 0x68a   : > { %v1531_v57 = vpop.f32.mrf.mxu0 }
 0x68b   : > { %v4267_v21 = vadd.f32 %v1531_v57, %v1267_v36 }
 0x68c   : > { %v3384_v58 = vpop.f32.mrf.mxu0 }
 0x68d   : > { %v4269_v45 = vadd.f32 %v3384_v58, %v1270_v44  ;;  %v1569_v23 = vpack.c.bf16 %v3384_v58, %v3383_v56 }
 0x68e   : > { %v4271_v24 = vpop.f32.mrf.mxu0 }
 0x68f   : > { %v1568_v59 = vpack.c.bf16 %v4271_v24, %v1531_v57  ;;  %3385 = vmatprep.subr.bf16.mxu1 %v1569_v23 }
 0x690   : > { %3386 = vmatpush3.bf16.msra.mxu1 %v1569_v23 }
 0x691   : > { %3387 = vmatprep.subr.bf16.mxu1 %v1568_v59 }
 0x694   : > { %3388 = vmatpush3.bf16.msra.mxu1 %v1568_v59 }
 0x695   : > { %3389 = vmatprep.subr.bf16.mxu1 %v1567_v60 }
 0x698   : > { %3390 = vmatpush3.bf16.msra.mxu1 %v1567_v60 }
 0x699   : > { %3391 = vmatprep.subr.bf16.mxu1 %v1566_v47 }
 0x69c   : > { %3392 = vmatpush3.bf16.msra.mxu1 %v1566_v47 }
 0x69d   : > { %3393 = vmatprep.subr.bf16.mxu1 %v1565_v61 }
 0x6a0   : > { %3394 = vmatpush3.bf16.msra.mxu1 %v1565_v61 }
 0x6a1   : > { %3395 = vmatprep.subr.bf16.mxu1 %v1564_v62 }
 0x6a4   : > { %3396 = vmatpush3.bf16.msra.mxu1 %v1564_v62 }
 0x6a5   : > { %3397 = vmatprep.subr.bf16.mxu1 %v1563_v0 }
 0x6a8   : > { %3398 = vmatpush3.bf16.msra.mxu1 %v1563_v0 }
 0x6a9   : > { %3399 = vmatprep.subr.bf16.mxu1 %v1562_v25 }
 0x6ac   : > { %3400 = vmatpush3.bf16.msra.mxu1 %v1562_v25 }
 0x6af   : > { %3402 = vmatmul.mubr.bf16.vlgmr.msra.gmra.mxu1 %v4020_v37  ;;  %v2980_v37 = vld [vmem:[%s4607_s3 + $0x3] ss:$0 sm:$0xff] }
 0x6b0   : > { %3405 = vmatprep.mubr.bf16.mxu1 %v4023_v38 }
 0x6b7   : > { %3406 = vmatmul.mubr.bf16.gmra.mxu1 %v4028_v39 }
 0x6b8   : > { %3409 = vmatprep.mubr.bf16.mxu1 %v4031_v40 }
 0x6bf   : > { %3410 = vmatmul.mubr.bf16.gmra.mxu1 %v4036_v41 }
 0x6c0   : > { %3413 = vmatprep.mubr.bf16.mxu1 %v4039_v42 }
 0x6c7   : > { %3414 = vmatmul.mubr.bf16.gmra.mxu1 %v4044_v43 }
 0x6c8   : > { %3453 = vmatprep.mubr.bf16.mxu1 %v4010_v10 }
 0x76f   : > { %v3403_v14 = vpop.f32.mrf.mxu1 }
 0x770   : > { %v1621_v39 = vadd.f32 %v3403_v14, %v2980_v37 }
 0x771   : > { %v1612_v22 = vpop.f32.mrf.mxu1 }
 0x772   : > { %v1613_v38 = vadd.f32 %v2980_v37, %v1612_v22  ;;  %v1677_v8 = vmax.f32 %v1621_v39, 0.0 }
 0x773   : > { %v3404_v26 = vpop.f32.mrf.mxu1 }
 0x774   : > { %v1624_v1 = vadd.f32 %v3404_v26, %v2980_v37  ;;  %v1675_v6 = vmax.f32 %v1613_v38, 0.0 }
 0x775   : > { %v1615_v3 = vpop.f32.mrf.mxu1 }
 0x776   : > { %v1616_v40 = vadd.f32 %v2980_v37, %v1615_v3  ;;  %v1678_v5 = vmax.f32 %v1624_v1, 0.0 }
 0x777   : > { %v3407_v41 = vpop.f32.mrf.mxu1 }
 0x778   : > { %v1676_v42 = vmax.f32 %v1616_v40, 0.0  ;;  %v1692_v10 = vpack.c.bf16 %v1678_v5, %v1677_v8  ;;  %v1637_v29 = vadd.f32 %v3407_v41, %v2980_v37  ;;  %v3661_v8 = vld [vmem:[%s4608_s4 + $0x40] sm:$0xff]  }
 0x779   : > { %v1628_v43 = vpop.f32.mrf.mxu1 }
 0x77a   : > { %v1691_v46 = vpack.c.bf16 %v1676_v42, %v1675_v6  ;;  %v1629_v28 = vadd.f32 %v2980_v37, %v1628_v43  ;;  %v1681_v53 = vmax.f32 %v1637_v29, 0.0  ;;  %v3660_v42 = vld [vmem:[%s4608_s4 + $0x48] sm:$0xff]  }
 0x77b   : > { %v3408_v48 = vpop.f32.mrf.mxu1  ;;  %3469 = vmatprep.subr.bf16.mxu0 %v3660_v42 }
 0x77c   : > { %v1640_v49 = vadd.f32 %v3408_v48, %v2980_v37  ;;  %3421 = vmatprep.mubr.msk.bf16.mxu0 %vm521_vm0, %v1691_v46  ;;  %v1679_v52 = vmax.f32 %v1629_v28, 0.0 }
 0x77d   : > { %v1631_v50 = vpop.f32.mrf.mxu1  ;;  %3422 = vmatmul.mubr.msk.bf16.vlgmr.msra.gmra.mxu0 %vm521_vm0, %v1692_v10 }
 0x77e   : > { %v1632_v30 = vadd.f32 %v2980_v37, %v1631_v50  ;;  %v1682_v51 = vmax.f32 %v1640_v49, 0.0  ;;  %3470 = vmatpush3.bf16.msra.mxu0 %v3660_v42 }
 0x77f   : > { %v3411_v31 = vpop.f32.mrf.mxu1  ;;  %3471 = vmatprep.subr.bf16.mxu0 %v3661_v8 }
 0x780   : > { %v1680_v32 = vmax.f32 %v1632_v30, 0.0  ;;  %v1694_v34 = vpack.c.bf16 %v1682_v51, %v1681_v53  ;;  %v1653_v36 = vadd.f32 %v3411_v31, %v2980_v37 }
 0x781   : > { %v1644_v33 = vpop.f32.mrf.mxu1 }
 0x782   : > { %v1693_v54 = vpack.c.bf16 %v1680_v32, %v1679_v52  ;;  %v1645_v35 = vadd.f32 %v2980_v37, %v1644_v33  ;;  %v1685_v47 = vmax.f32 %v1653_v36, 0.0  ;;  %3472 = vmatpush3.bf16.msra.mxu0 %v3661_v8 }
 0x783   : > { %v3412_v55 = vpop.f32.mrf.mxu1 }
 0x784   : > { %v1656_v56 = vadd.f32 %v3412_v55, %v2980_v37  ;;  %3425 = vmatprep.mubr.msk.bf16.mxu0 %vm521_vm0, %v1693_v54  ;;  %v1683_v59 = vmax.f32 %v1645_v35, 0.0 }
 0x785   : > { %v1647_v57 = vpop.f32.mrf.mxu1  ;;  %3426 = vmatmul.mubr.msk.bf16.gmra.mxu0 %vm521_vm0, %v1694_v34 }
 0x786   : > { %v1648_v44 = vadd.f32 %v2980_v37, %v1647_v57  ;;  %v1686_v58 = vmax.f32 %v1656_v56, 0.0 }
 0x787   : > { %v3415_v23 = vpop.f32.mrf.mxu1 }
 0x788   : > { %v1684_v60 = vmax.f32 %v1648_v44, 0.0  ;;  %v1696_v0 = vpack.c.bf16 %v1686_v58, %v1685_v47  ;;  %v1669_v26 = vadd.f32 %v3415_v23, %v2980_v37  ;;  %v4348_v58 = vld [vmem:[%s3985_s27 + $0x8] sm:$0xff]   ;;  %v4352_v23 = vld [vmem:[%s3985_s27 + $0x10] sm:$0xff]  }
 0x789   : > { %v1660_v61 = vpop.f32.mrf.mxu1  ;;  %v4364_v47 = vld [vmem:[%s3985_s27 + $0x28] sm:$0xff]  }
 0x78a   : > { %v1695_v62 = vpack.c.bf16 %v1684_v60, %v1683_v59  ;;  %v1661_v14 = vadd.f32 %v2980_v37, %v1660_v61  ;;  %v1689_v5 = vmax.f32 %v1669_v26, 0.0  ;;  %v4356_v59 = vld [vmem:[%s3985_s27 + $0x18] sm:$0xff]   ;;  %v4360_v60 = vld [vmem:[%s3985_s27 + $0x20] sm:$0xff]   ;;  %v4368_v61 = vld [vmem:[%s3985_s27 + $0x30] sm:$0xff]  }
 0x78b   : > { %v3416_v25 = vpop.f32.mrf.mxu1 }
 0x78c   : > { %v1672_v22 = vadd.f32 %v3416_v25, %v2980_v37  ;;  %3429 = vmatprep.mubr.msk.bf16.mxu0 %vm521_vm0, %v1695_v62  ;;  %v1687_v3 = vmax.f32 %v1661_v14, 0.0  ;;  %v4372_v62 = vld [vmem:[%s3985_s27 + $0x38] sm:$0xff]  }
 0x78d   : > { %v1663_v38 = vpop.f32.mrf.mxu1  ;;  %3430 = vmatmul.mubr.msk.bf16.gmra.mxu0 %vm521_vm0, %v1696_v0  ;;  %v3679_v0 = vld [vmem:[%s3985_s27] sm:$0xff]  }
 0x78e   : > { %v1664_v1 = vadd.f32 %v2980_v37, %v1663_v38  ;;  %v1690_v39 = vmax.f32 %v1672_v22, 0.0  ;;  %v2996_v22 = vld [vmem:[%s4607_s3 + $0x4] ss:$0 sm:$0xff] }
 0x790   : > { %v1688_v40 = vmax.f32 %v1664_v1, 0.0  ;;  %v1698_v6 = vpack.c.bf16 %v1690_v39, %v1689_v5 }
 0x792   : > { %v1697_v41 = vpack.c.bf16 %v1688_v40, %v1687_v3 }
 0x794   : > { %3433 = vmatprep.mubr.msk.bf16.mxu0 %vm521_vm0, %v1697_v41 }
 0x795   : > { %3434 = vmatmul.mubr.msk.bf16.gmra.mxu0 %vm521_vm0, %v1698_v6 }
 0x83d   : > { %v3423_v37 = vpop.f32.mrf.mxu0 }
 0x83e   : > { %v4300_v43 = vadd.f32 %v3423_v37, %v4215_v27 }
 0x83f   : > { %v1774_v46 = vpop.f32.mrf.mxu0 }
 0x840   : > { %v4303_v10 = vadd.f32 %v1774_v46, %v4219_v4 }
 0x841   : > { %v3424_v48 = vpop.f32.mrf.mxu0 }
 0x842   : > { %v4306_v28 = vadd.f32 %v3424_v48, %v4223_v7  ;;  %v1854_v57 = vpack.c.bf16 %v3424_v48, %v3423_v37 }
 0x843   : > { %v1777_v49 = vpop.f32.mrf.mxu0 }
 0x844   : > { %v4309_v29 = vadd.f32 %v1777_v49, %v4227_v9  ;;  %v1853_v44 = vpack.c.bf16 %v1777_v49, %v1774_v46 }
 0x845   : > { %v3427_v50 = vpop.f32.mrf.mxu0 }
 0x846   : > { %v4312_v30 = vadd.f32 %v3427_v50, %v4231_v11 }
 0x847   : > { %v1790_v51 = vpop.f32.mrf.mxu0 }
 0x848   : > { %v4315_v27 = vadd.f32 %v1790_v51, %v4235_v13 }
 0x849   : > { %v3428_v31 = vpop.f32.mrf.mxu0 }
 0x84a   : > { %v4318_v4 = vadd.f32 %v3428_v31, %v4239_v15 }
 0x84b   : > { %v1793_v52 = vpop.f32.mrf.mxu0 }
 0x84c   : > { %v4321_v7 = vadd.f32 %v1793_v52, %v4243_v16 }
 0x84d   : > { %v3431_v32 = vpop.f32.mrf.mxu0 }
 0x84e   : > { %v4324_v9 = vadd.f32 %v3431_v32, %v4247_v12 }
 0x84f   : > { %v1806_v53 = vpop.f32.mrf.mxu0 }
 0x850   : > { %v4327_v11 = vadd.f32 %v1806_v53, %v4251_v17 }
 0x851   : > { %v3432_v33 = vpop.f32.mrf.mxu0 }
 0x852   : > { %v4330_v13 = vadd.f32 %v3432_v33, %v4255_v18 }
 0x853   : > { %v1809_v54 = vpop.f32.mrf.mxu0 }
 0x854   : > { %v4333_v15 = vadd.f32 %v1809_v54, %v4259_v19  ;;  %v1858_v19 = vpack.c.bf16 %v3432_v33, %v3431_v32 }
 0x855   : > { %v3435_v34 = vpop.f32.mrf.mxu0 }
 0x856   : > { %v4336_v16 = vadd.f32 %v3435_v34, %v4263_v20  ;;  %v1857_v20 = vpack.c.bf16 %v1809_v54, %v1806_v53 }
 0x857   : > { %v1822_v55 = vpop.f32.mrf.mxu0 }
 0x858   : > { %v4339_v12 = vadd.f32 %v1822_v55, %v4267_v21  ;;  %v1856_v21 = vpack.c.bf16 %v3428_v31, %v3427_v50 }
 0x859   : > { %v3436_v35 = vpop.f32.mrf.mxu0 }
 0x85a   : > { %v4342_v17 = vadd.f32 %v3436_v35, %v4269_v45  ;;  %v1860_v56 = vpack.c.bf16 %v3436_v35, %v3435_v34  ;;  %v1855_v45 = vpack.c.bf16 %v1793_v52, %v1790_v51 }
 0x85b   : > { %v4344_v36 = vpop.f32.mrf.mxu0 }
 0x85c   : > { %v1859_v18 = vpack.c.bf16 %v4344_v36, %v1822_v55  ;;  %3437 = vmatprep.subr.bf16.mxu1 %v1860_v56 }
 0x85d   : > { %3438 = vmatpush3.bf16.msra.mxu1 %v1860_v56 }
 0x85e   : > { %3439 = vmatprep.subr.bf16.mxu1 %v1859_v18 }
 0x861   : > { %3440 = vmatpush3.bf16.msra.mxu1 %v1859_v18 }
 0x862   : > { %3441 = vmatprep.subr.bf16.mxu1 %v1858_v19 }
 0x865   : > { %3442 = vmatpush3.bf16.msra.mxu1 %v1858_v19 }
 0x866   : > { %3443 = vmatprep.subr.bf16.mxu1 %v1857_v20 }
 0x869   : > { %3444 = vmatpush3.bf16.msra.mxu1 %v1857_v20 }
 0x86a   : > { %3445 = vmatprep.subr.bf16.mxu1 %v1856_v21 }
 0x86d   : > { %3446 = vmatpush3.bf16.msra.mxu1 %v1856_v21 }
 0x86e   : > { %3447 = vmatprep.subr.bf16.mxu1 %v1855_v45 }
 0x871   : > { %3448 = vmatpush3.bf16.msra.mxu1 %v1855_v45 }
 0x872   : > { %3449 = vmatprep.subr.bf16.mxu1 %v1854_v57 }
 0x875   : > { %3450 = vmatpush3.bf16.msra.mxu1 %v1854_v57 }
 0x876   : > { %3451 = vmatprep.subr.bf16.mxu1 %v1853_v44 }
 0x879   : > { %3452 = vmatpush3.bf16.msra.mxu1 %v1853_v44 }
 0x87c   : > { %3454 = vmatmul.mubr.bf16.vlgmr.msra.gmra.mxu1 %v4348_v58 }
 0x87d   : > { %3457 = vmatprep.mubr.bf16.mxu1 %v4352_v23 }
 0x884   : > { %3458 = vmatmul.mubr.bf16.gmra.mxu1 %v4356_v59 }
 0x885   : > { %3461 = vmatprep.mubr.bf16.mxu1 %v4360_v60 }
 0x88c   : > { %3462 = vmatmul.mubr.bf16.gmra.mxu1 %v4364_v47 }
 0x88d   : > { %3465 = vmatprep.mubr.bf16.mxu1 %v4368_v61 }
 0x894   : > { %3466 = vmatmul.mubr.bf16.gmra.mxu1 %v4372_v62 }
 0x895   : > { %3505 = vmatprep.mubr.bf16.mxu1 %v3679_v0 }
 0x93c   : > { %v3455_v25 = vpop.f32.mrf.mxu1 }
 0x93d   : > { %v1912_v39 = vadd.f32 %v3455_v25, %v2996_v22 }
 0x93e   : > { %v1903_v14 = vpop.f32.mrf.mxu1 }
 0x93f   : > { %v1904_v38 = vadd.f32 %v2996_v22, %v1903_v14  ;;  %v1968_v8 = vmax.f32 %v1912_v39, 0.0 }
 0x940   : > { %v3456_v26 = vpop.f32.mrf.mxu1 }
 0x941   : > { %v1915_v1 = vadd.f32 %v3456_v26, %v2996_v22  ;;  %v1966_v6 = vmax.f32 %v1904_v38, 0.0 }
 0x942   : > { %v1906_v3 = vpop.f32.mrf.mxu1 }
 0x943   : > { %v1907_v40 = vadd.f32 %v2996_v22, %v1906_v3  ;;  %v1969_v5 = vmax.f32 %v1915_v1, 0.0 }
 0x944   : > { %v3459_v41 = vpop.f32.mrf.mxu1 }
 0x945   : > { %v1967_v42 = vmax.f32 %v1907_v40, 0.0  ;;  %v1983_v48 = vpack.c.bf16 %v1969_v5, %v1968_v8  ;;  %v1928_v31 = vadd.f32 %v3459_v41, %v2996_v22 }
 0x946   : > { %v1919_v37 = vpop.f32.mrf.mxu1 }
 0x947   : > { %v1982_v46 = vpack.c.bf16 %v1967_v42, %v1966_v6  ;;  %v1920_v50 = vadd.f32 %v2996_v22, %v1919_v37  ;;  %v1972_v55 = vmax.f32 %v1928_v31, 0.0  ;;  %v3662_v31 = vld [vmem:[%s4609_s5 + $0x8] sm:$0xff]  }
 0x948   : > { %v3460_v49 = vpop.f32.mrf.mxu1  ;;  %3521 = vmatprep.subr.bf16.mxu0 %v3662_v31 }
 0x949   : > { %v1931_v51 = vadd.f32 %v3460_v49, %v2996_v22  ;;  %3473 = vmatprep.mubr.msk.bf16.mxu0 %vm521_vm0, %v1982_v46  ;;  %v1970_v54 = vmax.f32 %v1920_v50, 0.0 }
 0x94a   : > { %v1922_v52 = vpop.f32.mrf.mxu1  ;;  %3474 = vmatmul.mubr.msk.bf16.vlgmr.msra.gmra.mxu0 %vm521_vm0, %v1983_v48 }
 0x94b   : > { %v1923_v32 = vadd.f32 %v2996_v22, %v1922_v52  ;;  %v1973_v53 = vmax.f32 %v1931_v51, 0.0  ;;  %v3663_v52 = vld [vmem:[%s4609_s5] sm:$0xff]   ;;  %3522 = vmatpush3.bf16.msra.mxu0 %v3662_v31 }
 0x94c   : > { %v3463_v33 = vpop.f32.mrf.mxu1  ;;  %3523 = vmatprep.subr.bf16.mxu0 %v3663_v52 }
 0x94d   : > { %v1971_v34 = vmax.f32 %v1923_v32, 0.0  ;;  %v1985_v18 = vpack.c.bf16 %v1973_v53, %v1972_v55  ;;  %v1944_v45 = vadd.f32 %v3463_v33, %v2996_v22 }
 0x94e   : > { %v1935_v35 = vpop.f32.mrf.mxu1 }
 0x94f   : > { %v1984_v56 = vpack.c.bf16 %v1971_v34, %v1970_v54  ;;  %v1936_v20 = vadd.f32 %v2996_v22, %v1935_v35  ;;  %v1976_v38 = vmax.f32 %v1944_v45, 0.0  ;;  %3524 = vmatpush3.bf16.msra.mxu0 %v3663_v52 }
 0x950   : > { %v3464_v19 = vpop.f32.mrf.mxu1 }
 0x951   : > { %v1947_v21 = vadd.f32 %v3464_v19, %v2996_v22  ;;  %3477 = vmatprep.mubr.msk.bf16.mxu0 %vm521_vm0, %v1984_v56  ;;  %v1974_v14 = vmax.f32 %v1936_v20, 0.0 }
 0x952   : > { %v1938_v57 = vpop.f32.mrf.mxu1  ;;  %3478 = vmatmul.mubr.msk.bf16.gmra.mxu0 %vm521_vm0, %v1985_v18 }
 0x953   : > { %v1939_v44 = vadd.f32 %v2996_v22, %v1938_v57  ;;  %v1977_v0 = vmax.f32 %v1947_v21, 0.0 }
 0x954   : > { %v3467_v25 = vpop.f32.mrf.mxu1 }
 0x955   : > { %v1975_v26 = vmax.f32 %v1939_v44, 0.0  ;;  %v1987_v3 = vpack.c.bf16 %v1977_v0, %v1976_v38  ;;  %v1960_v6 = vadd.f32 %v3467_v25, %v2996_v22 }
 0x956   : > { %v1951_v1 = vpop.f32.mrf.mxu1 }
 0x957   : > { %v1986_v39 = vpack.c.bf16 %v1975_v26, %v1974_v14  ;;  %v1952_v5 = vadd.f32 %v2996_v22, %v1951_v1  ;;  %v1980_v49 = vmax.f32 %v1960_v6, 0.0 }
 0x958   : > { %v3468_v40 = vpop.f32.mrf.mxu1 }
 0x959   : > { %v1963_v41 = vadd.f32 %v3468_v40, %v2996_v22  ;;  %3481 = vmatprep.mubr.msk.bf16.mxu0 %vm521_vm0, %v1986_v39  ;;  %v1978_v46 = vmax.f32 %v1952_v5, 0.0  ;;  %v3023_v40 = vld [vmem:[%s4610_s6] ss:$0 sm:$0xff] }
 0x95a   : > { %v1954_v42 = vpop.f32.mrf.mxu1  ;;  %3482 = vmatmul.mubr.msk.bf16.gmra.mxu0 %vm521_vm0, %v1987_v3  ;;  %2504 = vrot.lane.b32.xlu0 %v3023_v40, %s3802_s26 }
 0x95b   : > { %v1955_v8 = vadd.f32 %v2996_v22, %v1954_v42  ;;  %v1981_v37 = vmax.f32 %v1963_v41, 0.0 }
 0x95d   : > { %v1979_v48 = vmax.f32 %v1955_v8, 0.0  ;;  %v1989_v51 = vpack.c.bf16 %v1981_v37, %v1980_v49 }
 0x95f   : > { %v1988_v50 = vpack.c.bf16 %v1979_v48, %v1978_v46 }
 0x961   : > { %3485 = vmatprep.mubr.msk.bf16.mxu0 %vm521_vm0, %v1988_v50 }
 0x962   : > { %3486 = vmatmul.mubr.msk.bf16.gmra.mxu0 %vm521_vm0, %v1989_v51 }
 0xa0a   : > { %v3475_v22 = vpop.f32.mrf.mxu0 }
 0xa0b   : > { %v4394_v32 = vadd.f32 %v3475_v22, %v4300_v43 }
 0xa0c   : > { %v2065_v53 = vpop.f32.mrf.mxu0 }
 0xa0d   : > { %v4397_v33 = vadd.f32 %v2065_v53, %v4303_v10 }
 0xa0e   : > { %v3476_v54 = vpop.f32.mrf.mxu0 }
 0xa0f   : > { %v4400_v34 = vadd.f32 %v3476_v54, %v4306_v28 }
 0xa10   : > { %v2068_v55 = vpop.f32.mrf.mxu0 }
 0xa11   : > { %v4403_v35 = vadd.f32 %v2068_v55, %v4309_v29  ;;  %v2144_v3 = vpack.c.bf16 %v2068_v55, %v2065_v53 }
 0xa12   : > { %v3479_v56 = vpop.f32.mrf.mxu0 }
 0xa13   : > { %v4406_v18 = vadd.f32 %v3479_v56, %v4312_v30 }
 0xa14   : > { %v2081_v19 = vpop.f32.mrf.mxu0 }
 0xa15   : > { %v4409_v43 = vadd.f32 %v2081_v19, %v4315_v27 }
 0xa16   : > { %v3480_v20 = vpop.f32.mrf.mxu0 }
 0xa17   : > { %v4412_v10 = vadd.f32 %v3480_v20, %v4318_v4 }
 0xa18   : > { %v2084_v21 = vpop.f32.mrf.mxu0 }
 0xa19   : > { %v4415_v28 = vadd.f32 %v2084_v21, %v4321_v7  ;;  %v2146_v39 = vpack.c.bf16 %v2084_v21, %v2081_v19 }
 0xa1a   : > { %v3483_v45 = vpop.f32.mrf.mxu0 }
 0xa1b   : > { %v4418_v29 = vadd.f32 %v3483_v45, %v4324_v9 }
 0xa1c   : > { %v2097_v57 = vpop.f32.mrf.mxu0 }
 0xa1d   : > { %v4421_v30 = vadd.f32 %v2097_v57, %v4327_v11 }
 0xa1e   : > { %v3484_v44 = vpop.f32.mrf.mxu0 }
 0xa1f   : > { %v4424_v27 = vadd.f32 %v3484_v44, %v4330_v13 }
 0xa20   : > { %v2100_v0 = vpop.f32.mrf.mxu0 }
 0xa21   : > { %v4427_v4 = vadd.f32 %v2100_v0, %v4333_v15  ;;  %v2149_v15 = vpack.c.bf16 %v3484_v44, %v3483_v45 }
 0xa22   : > { %v3487_v25 = vpop.f32.mrf.mxu0 }
 0xa23   : > { %v4430_v7 = vadd.f32 %v3487_v25, %v4336_v16  ;;  %v2148_v16 = vpack.c.bf16 %v2100_v0, %v2097_v57 }
 0xa24   : > { %v2113_v14 = vpop.f32.mrf.mxu0 }
 0xa25   : > { %v4433_v9 = vadd.f32 %v2113_v14, %v4339_v12  ;;  %v2147_v12 = vpack.c.bf16 %v3480_v20, %v3479_v56 }
 0xa26   : > { %v3488_v26 = vpop.f32.mrf.mxu0 }
 0xa27   : > { %v4436_v11 = vadd.f32 %v3488_v26, %v4342_v17  ;;  %v2151_v38 = vpack.c.bf16 %v3488_v26, %v3487_v25  ;;  %v2145_v17 = vpack.c.bf16 %v3476_v54, %v3475_v22 }
 0xa28   : > { %v4438_v1 = vpop.f32.mrf.mxu0 }
 0xa29   : > { %v2150_v13 = vpack.c.bf16 %v4438_v1, %v2113_v14  ;;  %3489 = vmatprep.subr.bf16.mxu1 %v2151_v38 }
 0xa2a   : > { %3490 = vmatpush3.bf16.msra.mxu1 %v2151_v38 }
 0xa2b   : > { %3491 = vmatprep.subr.bf16.mxu1 %v2150_v13 }
 0xa2e   : > { %3492 = vmatpush3.bf16.msra.mxu1 %v2150_v13 }
 0xa2f   : > { %3493 = vmatprep.subr.bf16.mxu1 %v2149_v15 }
 0xa32   : > { %3494 = vmatpush3.bf16.msra.mxu1 %v2149_v15 }
 0xa33   : > { %3495 = vmatprep.subr.bf16.mxu1 %v2148_v16 }
 0xa36   : > { %3496 = vmatpush3.bf16.msra.mxu1 %v2148_v16 }
 0xa37   : > { %3497 = vmatprep.subr.bf16.mxu1 %v2147_v12 }
 0xa3a   : > { %3498 = vmatpush3.bf16.msra.mxu1 %v2147_v12 }
 0xa3b   : > { %3499 = vmatprep.subr.bf16.mxu1 %v2146_v39 }
 0xa3e   : > { %3500 = vmatpush3.bf16.msra.mxu1 %v2146_v39 }
 0xa3f   : > { %3501 = vmatprep.subr.bf16.mxu1 %v2145_v17 }
 0xa42   : > { %3502 = vmatpush3.bf16.msra.mxu1 %v2145_v17 }
 0xa43   : > { %3503 = vmatprep.subr.bf16.mxu1 %v2144_v3 }
 0xa46   : > { %3504 = vmatpush3.bf16.msra.mxu1 %v2144_v3 }
 0xa49   : > { %3506 = vmatmul.mubr.bf16.vlgmr.msra.gmra.mxu1 %v4348_v58 }
 0xa4a   : > { %3509 = vmatprep.mubr.bf16.mxu1 %v4352_v23  ;;  %v3012_v23 = vld [vmem:[%s4607_s3 + $0x5] ss:$0 sm:$0xff] }
 0xa51   : > { %3510 = vmatmul.mubr.bf16.gmra.mxu1 %v4356_v59 }
 0xa52   : > { %3513 = vmatprep.mubr.bf16.mxu1 %v4360_v60 }
 0xa59   : > { %3514 = vmatmul.mubr.bf16.gmra.mxu1 %v4364_v47 }
 0xa5a   : > { %3517 = vmatprep.mubr.bf16.mxu1 %v4368_v61 }
 0xa61   : > { %3518 = vmatmul.mubr.bf16.gmra.mxu1 %v4372_v62 }
 0xb09   : > { %v3507_v58 = vpop.f32.mrf.mxu1 }
 0xb0a   : > { %v2203_v41 = vadd.f32 %v3507_v58, %v3012_v23 }
 0xb0b   : > { %v2194_v5 = vpop.f32.mrf.mxu1 }
 0xb0c   : > { %v2195_v60 = vadd.f32 %v3012_v23, %v2194_v5  ;;  %v2259_v46 = vmax.f32 %v2203_v41, 0.0 }
 0xb0d   : > { %v3508_v59 = vpop.f32.mrf.mxu1 }
 0xb0e   : > { %v2206_v47 = vadd.f32 %v3508_v59, %v3012_v23  ;;  %v2257_v8 = vmax.f32 %v2195_v60, 0.0 }
 0xb0f   : > { %v2197_v61 = vpop.f32.mrf.mxu1 }
 0xb10   : > { %v2198_v6 = vadd.f32 %v3012_v23, %v2197_v61  ;;  %v2260_v62 = vmax.f32 %v2206_v47, 0.0 }
 0xb11   : > { %v3511_v42 = vpop.f32.mrf.mxu1 }
 0xb12   : > { %v2258_v37 = vmax.f32 %v2198_v6, 0.0  ;;  %v2274_v50 = vpack.c.bf16 %v2260_v62, %v2259_v46  ;;  %v2219_v22 = vadd.f32 %v3511_v42, %v3012_v23 }
 0xb13   : > { %v2210_v48 = vpop.f32.mrf.mxu1 }
 0xb14   : > { %v2273_v49 = vpack.c.bf16 %v2258_v37, %v2257_v8  ;;  %v2211_v31 = vadd.f32 %v3012_v23, %v2210_v48  ;;  %v2263_v21 = vmax.f32 %v2219_v22, 0.0 }
 0xb15   : > { %v3512_v51 = vpop.f32.mrf.mxu1 }
 0xb16   : > { %v2222_v52 = vadd.f32 %v3512_v51, %v3012_v23  ;;  %3525 = vmatprep.mubr.msk.bf16.mxu0 %vm521_vm0, %v2273_v49  ;;  %v2261_v19 = vmax.f32 %v2211_v31, 0.0 }
 0xb17   : > { %v2213_v53 = vpop.f32.mrf.mxu1  ;;  %3526 = vmatmul.mubr.msk.bf16.vlgmr.msra.gmra.mxu0 %vm521_vm0, %v2274_v50 }
 0xb18   : > { %v2214_v54 = vadd.f32 %v3012_v23, %v2213_v53  ;;  %v2264_v55 = vmax.f32 %v2222_v52, 0.0 }
 0xb19   : > { %v3515_v56 = vpop.f32.mrf.mxu1 }
 0xb1a   : > { %v2262_v20 = vmax.f32 %v2214_v54, 0.0  ;;  %v2276_v44 = vpack.c.bf16 %v2264_v55, %v2263_v21  ;;  %v2235_v26 = vadd.f32 %v3515_v56, %v3012_v23 }
 0xb1b   : > { %v2226_v45 = vpop.f32.mrf.mxu1 }
 0xb1c   : > { %v2275_v57 = vpack.c.bf16 %v2262_v20, %v2261_v19  ;;  %v2227_v25 = vadd.f32 %v3012_v23, %v2226_v45  ;;  %v2267_v17 = vmax.f32 %v2235_v26, 0.0 }
 0xb1d   : > { %v3516_v0 = vpop.f32.mrf.mxu1 }
 0xb1e   : > { %v2238_v14 = vadd.f32 %v3516_v0, %v3012_v23  ;;  %3529 = vmatprep.mubr.msk.bf16.mxu0 %vm521_vm0, %v2275_v57  ;;  %v2265_v12 = vmax.f32 %v2227_v25, 0.0  ;;  %v3664_v57 = vld [vmem:[%s4611_s7 + $0x8] sm:$0xff]   ;;  %v3665_v0 = vld [vmem:[%s4611_s7] sm:$0xff]   ;;  %v4490_v25 = vpop.permute.xlu0 %2504 }
 0xb1f   : > { %v2229_v38 = vpop.f32.mrf.mxu1  ;;  %3530 = vmatmul.mubr.msk.bf16.gmra.mxu0 %vm521_vm0, %v2276_v44  ;;  %v3803_v44 = vmov 0.0  }
 0xb20   : > { %v2230_v13 = vadd.f32 %v3012_v23, %v2229_v38  ;;  %v2268_v15 = vmax.f32 %v2238_v14, 0.0  ;;  %3541 = vmatprep.subr.bf16.mxu1 %v3803_v44  ;;  %3545 = vmatprep.mubr.msk.bf16.mxu1 %vm3804_vm1, %v3803_v44 }
 0xb21   : > { %v3519_v16 = vpop.f32.mrf.mxu1  ;;  %3542 = vmatpush3.bf16.msra.mxu1 %v3664_v57  ;;  %3549 = vmatprep.subr.bf16.mxu0 %v3803_v44 }
 0xb22   : > { %v2266_v39 = vmax.f32 %v2230_v13, 0.0  ;;  %v2278_v58 = vpack.c.bf16 %v2268_v15, %v2267_v17  ;;  %v2251_v47 = vadd.f32 %v3519_v16, %v3012_v23  ;;  %3543 = vmatprep.subr.bf16.mxu1 %v3803_v44 }
 0xb23   : > { %v2242_v3 = vpop.f32.mrf.mxu1 }
 0xb24   : > { %v2277_v40 = vpack.c.bf16 %v2266_v39, %v2265_v12  ;;  %v2243_v59 = vadd.f32 %v3012_v23, %v2242_v3  ;;  %v2271_v8 = vmax.f32 %v2251_v47, 0.0 }
 0xb25   : > { %v3520_v5 = vpop.f32.mrf.mxu1  ;;  %3544 = vmatpush3.bf16.msra.mxu1 %v3665_v0 }
 0xb26   : > { %v2254_v60 = vadd.f32 %v3520_v5, %v3012_v23  ;;  %3533 = vmatprep.mubr.msk.bf16.mxu0 %vm521_vm0, %v2277_v40  ;;  %v2269_v62 = vmax.f32 %v2243_v59, 0.0 }
 0xb27   : > { %v2245_v41 = vpop.f32.mrf.mxu1  ;;  %3534 = vmatmul.mubr.msk.bf16.gmra.mxu0 %vm521_vm0, %v2278_v58 }
 0xb28   : > { %v2246_v61 = vadd.f32 %v3012_v23, %v2245_v41  ;;  %v2272_v6 = vmax.f32 %v2254_v60, 0.0 }
 0xb2a   : > { %v2270_v42 = vmax.f32 %v2246_v61, 0.0  ;;  %v2280_v46 = vpack.c.bf16 %v2272_v6, %v2271_v8 }
 0xb2c   : > { %v2279_v37 = vpack.c.bf16 %v2270_v42, %v2269_v62 }
 0xb2e   : > { %3537 = vmatprep.mubr.msk.bf16.mxu0 %vm521_vm0, %v2279_v37 }
 0xb2f   : > { %3538 = vmatmul.mubr.msk.bf16.gmra.mxu0 %vm521_vm0, %v2280_v46 }
 0xb30   : > { %3553 = vmatprep.mubr.msk.bf16.mxu0 %vm3804_vm1, %v3803_v44 }
 0xbd7   : > { %v3527_v48 = vpop.f32.mrf.mxu0 }
 0xbd8   : > { %2438 = vrot.lane.b32.xlu1 %v3527_v48, %s3802_s26 }
 0xbd9   : > { %v2355_v49 = vpop.f32.mrf.mxu0 }
 0xbda   : > { %2434 = vrot.lane.b32.xlu0 %v2355_v49, %s3802_s26 }
 0xbdb   : > { %v3528_v50 = vpop.f32.mrf.mxu0 }
 0xbdc   : > { %2440 = vrot.lane.b32.xlu1 %v3528_v50, %s3802_s26 }
 0xbdd   : > { %v2358_v23 = vpop.f32.mrf.mxu0 }
 0xbde   : > { %2436 = vrot.lane.b32.xlu0 %v2358_v23, %s3802_s26 }
 0xbdf   : > { %v3531_v51 = vpop.f32.mrf.mxu0 }
 0xbe1   : > { %v2371_v31 = vpop.f32.mrf.mxu0 }
 0xbe2   : > { %2446 = vrot.lane.b32.xlu0 %v3531_v51, %s3802_s26 }
 0xbe3   : > { %v3532_v52 = vpop.f32.mrf.mxu0 }
 0xbe4   : > { %2448 = vrot.lane.b32.xlu1 %v3532_v52, %s3802_s26 }
 0xbe5   : > { %v2374_v22 = vpop.f32.mrf.mxu0 }
 0xbe6   : > { %2442 = vrot.lane.b32.xlu0 %v2371_v31, %s3802_s26 }
 0xbe7   : > { %v3535_v53 = vpop.f32.mrf.mxu0 }
 0xbe8   : > { %2444 = vrot.lane.b32.xlu1 %v2374_v22, %s3802_s26 }
 0xbe9   : > { %v2387_v54 = vpop.f32.mrf.mxu0 }
 0xbeb   : > { %v3536_v55 = vpop.f32.mrf.mxu0 }
 0xbec   : > { %2454 = vrot.lane.b32.xlu1 %v3535_v53, %s3802_s26  ;;  %2456 = vrot.lane.b32.xlu0 %v3536_v55, %s3802_s26 }
 0xbed   : > { %v2390_v56 = vpop.f32.mrf.mxu0 }
 0xbef   : > { %v3539_v19 = vpop.f32.mrf.mxu0 }
 0xbf0   : > { %2450 = vrot.lane.b32.xlu1 %v2387_v54, %s3802_s26  ;;  %2452 = vrot.lane.b32.xlu0 %v2390_v56, %s3802_s26 }
 0xbf1   : > { %v2403_v20 = vpop.f32.mrf.mxu0 }
 0xbf3   : > { %v3540_v21 = vpop.f32.mrf.mxu0 }
 0xbf4   : > { %2458 = vrot.lane.b32.xlu1 %v2403_v20, %s3802_s26 }
 0xbf5   : > { %v2406_v45 = vpop.f32.mrf.mxu0 }
 0xbf6   : > { %2460 = vrot.lane.b32.xlu0 %v2406_v45, %s3802_s26 }
 0xbf8   : > { %2462 = vrot.lane.b32.xlu1 %v3539_v19, %s3802_s26 }
 0xbfa   : > { %2464 = vrot.lane.b32.xlu0 %v3540_v21, %s3802_s26 }
 0xc4a   : > { %v2439_v14 = vpop.permute.xlu1 %2438 }
 0xc4b   : > { %v2484_v26 = vadd.f32 %v2439_v14, %v4394_v32 }
 0xc4c   : > { %v2435_v38 = vpop.permute.xlu0 %2434 }
 0xc4d   : > { %v2509_v13 = vadd.f32 %v4490_v25, %v2484_v26  ;;  %v2482_v15 = vadd.f32 %v2435_v38, %v4397_v33 }
 0xc4e   : > { %v2441_v16 = vpop.permute.xlu1 %2440 }
 0xc4f   : > { %v2507_v12 = vadd.f32 %v4490_v25, %v2482_v15  ;;  %v2485_v39 = vadd.f32 %v2441_v16, %v4400_v34  ;;  %v2525_v3 = vmax.f32 %v2509_v13, 0.0 }
 0xc50   : > { %v2437_v17 = vpop.permute.xlu0 %2436 }
 0xc51   : > { %v2510_v40 = vadd.f32 %v4490_v25, %v2485_v39  ;;  %v2483_v58 = vadd.f32 %v2437_v17, %v4403_v35  ;;  %v2523_v5 = vmax.f32 %v2507_v12, 0.0  ;;  %v2549_v47 = vsel %vm2539_vm2, %v2525_v3, 0.0 }
 0xc53   : > { %v2526_v59 = vmax.f32 %v2510_v40, 0.0  ;;  %v2508_v32 = vadd.f32 %v4490_v25, %v2483_v58  ;;  %v2540_v62 = vsel %vm2539_vm2, %v2523_v5, 0.0 }
 0xc54   : > { %v2447_v60 = vpop.permute.xlu0 %2446 }
 0xc55   : > { %v2550_v33 = vsel %vm2539_vm2, %v2526_v59, 0.0  ;;  %v2524_v41 = vmax.f32 %v2508_v32, 0.0  ;;  %v2488_v61 = vadd.f32 %v2447_v60, %v4406_v18  ;;  %v1268_v18 = vadd.f32 %v4170_v2, %v4097_v63 }
 0xc56   : > { %v2551_v34 = vadd.f32 %v2550_v33, %v2549_v47  ;;  %v2449_v6 = vpop.permute.xlu1 %2448 }
 0xc57   : > { %v2541_v42 = vsel %vm2539_vm2, %v2524_v41, 0.0  ;;  %v2513_v35 = vadd.f32 %v4490_v25, %v2488_v61  ;;  %v2489_v8 = vadd.f32 %v2449_v6, %v4412_v10  ;;  %v1559_v10 = vadd.f32 %v4271_v24, %v1268_v18 }
 0xc58   : > { %v2552_v37 = vrot.slane %v2551_v34, 4  ;;  %v2542_v46 = vadd.f32 %v2541_v42, %v2540_v62  ;;  %v2443_v48 = vpop.permute.xlu0 %2442 }
 0xc59   : > { %v2529_v49 = vmax.f32 %v2513_v35, 0.0  ;;  %v2514_v50 = vadd.f32 %v4490_v25, %v2489_v8  ;;  %v2486_v23 = vadd.f32 %v2443_v48, %v4409_v43  ;;  %v1850_v63 = vadd.f32 %v4344_v36, %v1559_v10 }
 0xc5a   : > { %v2553_v51 = vadd.f32 %v2552_v37, %v2551_v34  ;;  %v2543_v31 = vrot.slane %v2542_v46, 4  ;;  %v2445_v52 = vpop.permute.xlu1 %2444 }
 0xc5b   : > { %v2530_v22 = vmax.f32 %v2514_v50, 0.0  ;;  %v2511_v53 = vadd.f32 %v4490_v25, %v2486_v23  ;;  %v2487_v54 = vadd.f32 %v2445_v52, %v4415_v28  ;;  %v2567_v19 = vsel %vm2539_vm2, %v2529_v49, 0.0 }
 0xc5c   : > { %v2554_v55 = vrot.slane %v2553_v51, 2  ;;  %v2544_v56 = vadd.f32 %v2543_v31, %v2542_v46  ;;  %v2141_v38 = vadd.f32 %v4438_v1, %v1850_v63 }
 0xc5d   : > { %v2568_v20 = vsel %vm2539_vm2, %v2530_v22, 0.0  ;;  %v2527_v43 = vmax.f32 %v2511_v53, 0.0  ;;  %v2512_v21 = vadd.f32 %v4490_v25, %v2487_v54 }
 0xc5e   : > { %v2555_v2 = vadd.f32 %v2554_v55, %v2553_v51  ;;  %v2545_v45 = vrot.slane %v2544_v56, 2  ;;  %v2569_v57 = vadd.f32 %v2568_v20, %v2567_v19  ;;  %v2455_v0 = vpop.permute.xlu1 %2454  ;;  %v2457_v14 = vpop.permute.xlu0 %2456 }
 0xc5f   : > { %v2528_v26 = vmax.f32 %v2512_v21, 0.0  ;;  %v2492_v28 = vadd.f32 %v2455_v0, %v4418_v29  ;;  %v2493_v24 = vadd.f32 %v2457_v14, %v4424_v27  ;;  %v2558_v12 = vsel %vm2539_vm2, %v2527_v43, 0.0 }
 0xc60   : > { %v2556_v13 = vrot.slane %v2555_v2, 1  ;;  %v2546_v15 = vadd.f32 %v2545_v45, %v2544_v56  ;;  %v2570_v16 = vrot.slane %v2569_v57, 4 }
 0xc61   : > { %v2559_v39 = vsel %vm2539_vm2, %v2528_v26, 0.0  ;;  %v2517_v36 = vadd.f32 %v4490_v25, %v2492_v28  ;;  %v2518_v17 = vadd.f32 %v4490_v25, %v2493_v24 }
 0xc62   : > { %v2557_v3 = vadd.f32 %v2556_v13, %v2555_v2  ;;  %v2547_v40 = vrot.slane %v2546_v15, 1  ;;  %v2571_v58 = vadd.f32 %v2570_v16, %v2569_v57  ;;  %v2560_v5 = vadd.f32 %v2559_v39, %v2558_v12  ;;  %v2451_v29 = vpop.permute.xlu1 %2450  ;;  %v2453_v59 = vpop.permute.xlu0 %2452 }
 0xc63   : > { %v2533_v27 = vmax.f32 %v2517_v36, 0.0  ;;  %v2534_v32 = vmax.f32 %v2518_v17, 0.0  ;;  %v2490_v1 = vadd.f32 %v2451_v29, %v4421_v30  ;;  %v2491_v60 = vadd.f32 %v2453_v59, %v4427_v4 }
 0xc64   : > { %v2613_v47 = vpack.c.bf16 %v2557_v3, %v2557_v3  ;;  %v2548_v33 = vadd.f32 %v2547_v40, %v2546_v15  ;;  %v2572_v41 = vrot.slane %v2571_v58, 2  ;;  %v2561_v61 = vrot.slane %v2560_v5, 4 }
 0xc65   : > { %v2585_v34 = vsel %vm2539_vm2, %v2533_v27, 0.0  ;;  %v2586_v6 = vsel %vm2539_vm2, %v2534_v32, 0.0  ;;  %v2515_v62 = vadd.f32 %v4490_v25, %v2490_v1  ;;  %v2516_v42 = vadd.f32 %v4490_v25, %v2491_v60 }
 0xc66   : > { %v2612_v35 = vpack.c.bf16 %v2548_v33, %v2548_v33  ;;  %v2573_v8 = vadd.f32 %v2572_v41, %v2571_v58  ;;  %v2562_v37 = vadd.f32 %v2561_v61, %v2560_v5  ;;  %v2459_v46 = vpop.permute.xlu1 %2458  ;;  %v2587_v30 = vadd.f32 %v2586_v6, %v2585_v34 }
 0xc67   : > { %v2531_v48 = vmax.f32 %v2515_v62, 0.0  ;;  %v2532_v4 = vmax.f32 %v2516_v42, 0.0  ;;  %v2494_v49 = vadd.f32 %v2459_v46, %v4433_v9  ;;  %v2640_v50 = vunpack.c.l.b16 %v2613_v47 }
 0xc68   : > { %v2639_v23 = vunpack.c.l.b16 %v2612_v35  ;;  %v2574_v18 = vrot.slane %v2573_v8, 1  ;;  %v2563_v51 = vrot.slane %v2562_v37, 2  ;;  %v2461_v31 = vpop.permute.xlu0 %2460  ;;  %v2588_v52 = vrot.slane %v2587_v30, 4 }
 0xc69   : > { %v2576_v22 = vsel %vm2539_vm2, %v2531_v48, 0.0  ;;  %v2577_v53 = vsel %vm2539_vm2, %v2532_v4, 0.0  ;;  %v2519_v54 = vadd.f32 %v4490_v25, %v2494_v49  ;;  %v2495_v9 = vadd.f32 %v2461_v31, %v2141_v38 }
 0xc6a   : > { %v2648_v10 = vsel %vm2647_vm3, %v2640_v50, %v2639_v23  ;;  %v2564_v55 = vadd.f32 %v2563_v51, %v2562_v37  ;;  %v2578_v56 = vadd.f32 %v2577_v53, %v2576_v22  ;;  %v2463_v19 = vpop.permute.xlu1 %2462  ;;  %v2575_v20 = vadd.f32 %v2574_v18, %v2573_v8  ;;  %v3666_v18 = vld [vmem:[%s4613_s9 + $0x8] sm:$0xff]  }
 0xc6b   : > { %v2589_v43 = vadd.f32 %v2588_v52, %v2587_v30  ;;  %v2496_v21 = vadd.f32 %v2463_v19, %v4430_v7  ;;  %v2535_v0 = vmax.f32 %v2519_v54, 0.0  ;;  %v2520_v14 = vadd.f32 %v4490_v25, %v2495_v9  ;;  %3550 = vmatpush3.bf16.msra.mxu0 %v3666_v18  ;;  %v3667_v52 = vld [vmem:[%s4613_s9] sm:$0xff]  }
 0xc6c   : > { %v2565_v63 = vrot.slane %v2564_v55, 1  ;;  %v2579_v2 = vrot.slane %v2578_v56, 4  ;;  %v2465_v45 = vpop.permute.xlu0 %2464  ;;  %v2615_v15 = vpack.c.bf16 %v2575_v20, %v2575_v20  ;;  %3551 = vmatprep.subr.bf16.mxu0 %v3803_v44  ;;  %v3024_v9 = vld [vmem:[%s4612_s8] ss:$0 sm:$0xff] }
 0xc6d   : > { %v2590_v57 = vrot.slane %v2589_v43, 2  ;;  %v2521_v26 = vadd.f32 %v4490_v25, %v2496_v21  ;;  %v2497_v13 = vadd.f32 %v2465_v45, %v4436_v11  ;;  %v2536_v12 = vmax.f32 %v2520_v14, 0.0  ;;  %v3028_v14 = vld [vmem:[%s4614_s10] ss:$0 sm:$0xff] }
 0xc6e   : > { %v2566_v28 = vadd.f32 %v2565_v63, %v2564_v55  ;;  %v2580_v24 = vadd.f32 %v2579_v2, %v2578_v56  ;;  %v2594_v3 = vsel %vm2539_vm2, %v2535_v0, 0.0  ;;  %v2642_v11 = vunpack.c.l.b16 %v2615_v15 }
 0xc6f   : > { %v2591_v16 = vadd.f32 %v2590_v57, %v2589_v43  ;;  %v2537_v39 = vmax.f32 %v2521_v26, 0.0  ;;  %v2522_v7 = vadd.f32 %v4490_v25, %v2497_v13  ;;  %v2595_v40 = vsel %vm2539_vm2, %v2536_v12, 0.0  ;;  %3552 = vmatpush3.bf16.msra.mxu0 %v3667_v52 }
 0xc70   : > { %v2614_v38 = vpack.c.bf16 %v2566_v28, %v2566_v28  ;;  %v2581_v36 = vrot.slane %v2580_v24, 2  ;;  %v2596_v29 = vadd.f32 %v2595_v40, %v2594_v3 }
 0xc71   : > { %v2592_v17 = vrot.slane %v2591_v16, 1  ;;  %v2538_v59 = vmax.f32 %v2522_v7, 0.0  ;;  %v2603_v32 = vsel %vm2539_vm2, %v2537_v39, 0.0 }
 0xc72   : > { %v2641_v58 = vunpack.c.l.b16 %v2614_v38  ;;  %v2582_v5 = vadd.f32 %v2581_v36, %v2580_v24  ;;  %v2597_v60 = vrot.slane %v2596_v29, 4 }
 0xc73   : > { %v2593_v27 = vadd.f32 %v2592_v17, %v2591_v16  ;;  %v2604_v47 = vsel %vm2539_vm2, %v2538_v59, 0.0 }
 0xc74   : > { %v2583_v1 = vrot.slane %v2582_v5, 1  ;;  %v2650_v25 = vsel %vm2649_vm4, %v2641_v58, %v2648_v10  ;;  %v2605_v33 = vadd.f32 %v2604_v47, %v2603_v32  ;;  %v2598_v34 = vadd.f32 %v2597_v60, %v2596_v29 }
 0xc75   : > { %v2652_v41 = vsel %vm2651_vm5, %v2642_v11, %v2650_v25  ;;  %v2617_v6 = vpack.c.bf16 %v2593_v27, %v2593_v27 }
 0xc76   : > { %v2584_v61 = vadd.f32 %v2583_v1, %v2582_v5  ;;  %v2606_v62 = vrot.slane %v2605_v33, 4  ;;  %v2599_v35 = vrot.slane %v2598_v34, 2 }
 0xc77   : > { %v2644_v30 = vunpack.c.l.b16 %v2617_v6 }
 0xc78   : > { %v2616_v42 = vpack.c.bf16 %v2584_v61, %v2584_v61  ;;  %v2607_v8 = vadd.f32 %v2606_v62, %v2605_v33  ;;  %v2600_v46 = vadd.f32 %v2599_v35, %v2598_v34 }
 0xc7a   : > { %v2643_v37 = vunpack.c.l.b16 %v2616_v42  ;;  %v2608_v48 = vrot.slane %v2607_v8, 2  ;;  %v2601_v4 = vrot.slane %v2600_v46, 1 }
 0xc7c   : > { %v2654_v49 = vsel %vm2653_vm6, %v2643_v37, %v2652_v41  ;;  %v2609_v50 = vadd.f32 %v2608_v48, %v2607_v8  ;;  %v2602_v51 = vadd.f32 %v2601_v4, %v2600_v46 }
 0xc7d   : > { %v2656_v23 = vsel %vm2655_vm7, %v2644_v30, %v2654_v49 }
 0xc7e   : > { %v2610_v31 = vrot.slane %v2609_v50, 1  ;;  %v2618_v22 = vpack.c.bf16 %v2602_v51, %v2602_v51 }
 0xc80   : > { %v2611_v53 = vadd.f32 %v2610_v31, %v2609_v50  ;;  %v2645_v54 = vunpack.c.l.b16 %v2618_v22 }
 0xc82   : > { %v2619_v10 = vpack.c.bf16 %v2611_v53, %v2611_v53  ;;  %v2658_v55 = vsel %vm2657_vm8, %v2645_v54, %v2656_v23 }
 0xc84   : > { %v2646_v56 = vunpack.c.l.b16 %v2619_v10 }
 0xc86   : > { %v2660_v19 = vsel %vm2659_vm9, %v2646_v56, %v2658_v55 }
 0xc87   : > { %v2661_v20 = vpack.c.b16 %v2660_v19, %v2660_v19 }
 0xc89   : > { %2662 = vrot.lane.b32.xlu1 %v2661_v20, %s3805_s15  ;;  %s3708_s15 = scalar_lea.vmem %s2815_s12, 128 }
 0xc8a   : > { %p3709_p1 = scmp.ne.s32.totalorder %s2815_s12, %s3708_s15  ;;  %p3716_p11 = scmp.lt.s32.totalorder %s3714_s24, %s3708_s15 }
 0xc8c   : > { %p3710_p4 = pnand %p3709_p1, %p4637_p2  ;;  %p3717_p0 = por %p3716_p11, %p3715_p10 }
 0xc8e   : > { %p3711_p9 = pneg %p3710_p4 }
 0xc90   : > { %p3718_p3 = pnand %p3717_p0, %p3711_p9 }
 0xcfb   : > { %v2663_v43 = vpop.permute.xlu1 %2662 }
 0xcfc   : > { %3546 = vmatmul.mubr.msk.bf16.vlgmr.msra.gmra.mxu1 %vm521_vm0, %v2663_v43 }
 0xdbc   : > { %v2713_v44 = vpop.f32.mrf.mxu1 }
 0xdbd   : > { %v2714_v21 = vadd.f32 %v3024_v9, %v2713_v44 }
 0xdbe   : > { %v3547_v63 = vpop.f32.mrf.mxu1 }
 0xdbf   : > { %v2719_v2 = vmax.f32 %v2714_v21, 0.0 }
 0xdc0   : > { %v2716_v45 = vpop.f32.mrf.mxu1 }
 0xdc1   : > { %v2720_v57 = vpack.c.bf16 %v2719_v2, %v2719_v2 }
 0xdc2   : > { %v3548_v0 = vpop.f32.mrf.mxu1 }
 0xdc3   : > { %3554 = vmatmul.mubr.msk.bf16.vlgmr.msra.gmra.mxu0 %vm521_vm0, %v2720_v57 }
 0xe83   : > { %v2781_v26 = vpop.f32.mrf.mxu0 }
 0xe84   : > { %v2782_v28 = vadd.f32 %v3028_v14, %v2781_v26 }
 0xe85   : > { %v3555_v24 = vpop.f32.mrf.mxu0 }
 0xe86   : > { %2787 = vmax.xlane.f32.xlu0 %v2782_v28 }
 0xe87   : > { %v2784_v13 = vpop.f32.mrf.mxu0 }
 0xe89   : > { %v3556_v15 = vpop.f32.mrf.mxu0 }
 0xf0f   : > { %v2788_v16 = vpop.xlane.xlu0 %2787 }
 0xf10   : > { %v2789_v12 = vsub.f32 %v2782_v28, %v2788_v16 }
 0xf12   : > { %v2790_v39 = vmul.f32 1.442695, %v2789_v12 }
 0xf14   : > { %3668 = vpow2.f32 %v2790_v39 }
 0xf21   : > { %v3669_v38 = vpop.eup %3668 }
 0xf22   : > { %2792 = vadd.xlane.f32.xlu1 %v3669_v38 }
 0xfab   : > { %v2793_v36 = vpop.xlane.xlu1 %2792 }
 0xfac   : > { %3670 = vrcp.f32 %v2793_v36 }
 0xfb9   : > { %v3671_v7 = vpop.eup %3670 }
 0xfba   : > { %v2795_v17 = vmul.f32 %v3671_v7, %v2793_v36 }
 0xfbc   : > { %v2796_v3 = vsub.f32 2.0, %v2795_v17 }
 0xfbe   : > { %v2797_v40 = vmul.f32 %v3671_v7, %v2796_v3 }
 0xfc0   : > { %v2798_v58 = vmul.f32 %v3669_v38, %v2797_v40 }
 0xfc2   : > { %2799 = vst [vmem:[%s424_s22] sm:$0xff] %v2798_v58 }
 0xfc3   : > { %3721 = shalt.err (!%p3718_p3)
}
 0xfc4   : > { %s3722_s26 = scalar_lea.hbm %s2812_s25, 128  ;;  %s3726_s30 = scalar_lea.hbm %s4615_s11, 256 }
 0xfc5   : > { %p3723_p7 = scmp.ne.s32.totalorder %s2812_s25, %s3722_s26  ;;  %p3727_p8 = scmp.lt.s32.totalorder %s2812_s25, %s4615_s11 }
 0xfc6   : > { %p3728_p6 = scmp.lt.s32.totalorder %s3726_s30, %s3722_s26 }
 0xfc7   : > { %p3724_p12 = pnand %p3723_p7, %p4637_p2 }
 0xfc8   : > { %p3729_p13 = por %p3728_p6, %p3727_p8 }
 0xfc9   : > { %p3725_p5 = pneg %p3724_p12 }
 0xfcb   : > { %p3730_p1 = pnand %p3729_p13, %p3725_p5 }
 0xfcd   : > { %3733 = shalt.err (!%p3730_p1)
}
 0xfce   : > { %3559 = dma.vmem_to_hbm [thread:$0]  (%p4637_p2), %s2815_s12, 128, %s2812_s25, %s2801_s17  }
 0xfcf PF: > { %s4638_s14 = sld [smem:[#allocation8_spill]]  ;;  %p4641_p9 = scmp.ge.s32.totalorder %s3796_s23, 2 }
 0xfd0   : > { %s4639_s27 = sld [smem:[#allocation14_spill]] }
 0xfd5   : > { %s2826_s15 = sand.u32 1, %s4638_s14  }
 0xfd6   : > { %p4640_p4 = scmp.ne.s32.totalorder %s4639_s27, 0  ;;  %s2827_s20 = scalar_lea.sflag [#allocation4], %s2826_s15 }
 0xfd8   : > { %p3566_p10 = pnand %p4641_p9, %p4640_p4 }
 0xfda   : > { %p3567_p11 = pneg %p3566_p10 }
 0xfdc   : > { %3767 = dma.done.wait (%p3567_p11), %s2827_s20, 128  }
 0xfdd   : > { %3769 = vsyncadd (%p3567_p11), %s2827_s20, 4294967168  ;;  %s4642_s23 = sld [smem:[#allocation11_spill]]  ;;  %s4647_s17 = smov %s3776_s18 }
 0xfde   : > { %s4643_s29 = sld [smem:[#allocation9_spill]]  ;;  %s4649_s20 = smov %s3788_s21 }
 0xfdf   : > { %s4644_s19 = sld [smem:[#allocation13_spill]] }
 0xfe0   : > { %s4645_s24 = sld [smem:[#allocation10_spill]] }
 0xfe1   : > { %s4646_s22 = sld [smem:[#allocation12_spill]] }
 0xfe3   : > { %p24_p2 = scmp.ge.s32.totalorder %s4642_s23, 4  }
 0xfe4   : > { %s4648_s18 = smov %s4643_s29 }
 0xfe5   :  { %26 = sbr.rel (!%p24_p2) target bundleno = 7 (0x7), region = 121 }
 0xfe6   : > { %s4650_s21 = smov %s4645_s24 }
 0xfea   :  { %2832 = vsyncpa [#allocation3], 1 }
 0xfeb   :  { %2834 = vsyncpa [#allocation3 + $0x1], 1 }
 0xfec   :  { %2835 = vsyncpa [#allocation4], 1 }
 0xfed   :  { %2837 = vsyncpa [#allocation4 + $0x1], 1 }

</bundles_post_ra>
